<compile_context>
chip_gen: v6e
topology: v6e:2x2x1
jax: 0.10.0
libtpu: 0.0.40
codegen_flags: <defaults>
</compile_context>

<pallas_src>
import functools

import jax
import jax.numpy as jnp
from jax import lax
from jax.experimental import pallas as pl
from jax.experimental.pallas import tpu as pltpu


# ---------------------------------------------------------------------------
# Pallas kernel: tiled matmul, K-reduction accumulator, fused LeakyReLU epilogue
# ---------------------------------------------------------------------------
def _matmul_kernel(a_ref, w_ref, o_ref, acc_ref, *, leaky):
    """acc += A_tile @ W_tile (bf16 MXU inputs, f32 accumulation)."""

    @pl.when(pl.program_id(1) == 0)
    def _init():
        acc_ref[...] = jnp.zeros_like(acc_ref)

    acc_ref[...] += jnp.dot(
        a_ref[...].astype(jnp.bfloat16),
        w_ref[...].astype(jnp.bfloat16),
        preferred_element_type=jnp.float32,
    )

    @pl.when(pl.program_id(1) == pl.num_programs(1) - 1)
    def _finalize():
        y = acc_ref[...]
        if leaky is not None:           # static; fused LeakyReLU, kept in f32 (VPU)
            y = jnp.where(y > 0, y, leaky * y)
        o_ref[...] = y.astype(o_ref.dtype)


def _round_up(x, m):
    return (x + m - 1) // m * m


def _pick_tile(dim, candidates):
    for t in candidates:
        if dim % t == 0:
            return t
    return candidates[-1]


def pallas_matmul(a, w, *, leaky=None):
    """(M, K) @ (K, N) with f32 accumulation and optional fused LeakyReLU.

    * M padded to a multiple of 8, K and N padded to multiples of 128
      (lane-dense stores; zero padding is exact for a bias-free matmul).
    * grid = (M // tm, K // tk); M axis "parallel" (megacore on v7x),
      K axis "arbitrary" with a VMEM f32 accumulator.
    * N (output channels) is small for this module, so it stays untiled.
    """
    M, K = a.shape
    Kw, N = w.shape
    assert K == Kw

    Mp = _round_up(M, 8)
    Kp = _round_up(K, 128)
    Np = _round_up(N, 128)

    a_p = a if (Mp, Kp) == (M, K) else jnp.zeros((Mp, Kp), a.dtype).at[:M, :K].set(a)
    w_p = w if (Kp, Np) == (K, N) else jnp.zeros((Kp, Np), w.dtype).at[:K, :N].set(w)

    # v7x has half the VMEM of v5e/v6e; these tiles keep the double-buffered
    # working set well under the default scoped VMEM limit on all generations.
    tm = _pick_tile(Mp, (512, 256, 128, 64, 32, 16, 8))
    tk = _pick_tile(Kp, (512, 384, 256, 128))
    grid = (Mp // tm, Kp // tk)

    cost = pl.CostEstimate(
        flops=2 * Mp * Kp * Np,
        transcendentals=0,
        bytes_accessed=4 * (Mp * Kp + Kp * Np + Mp * Np),
    )

    out = pl.pallas_call(
        functools.partial(_matmul_kernel, leaky=leaky),
        grid=grid,
        in_specs=[
            pl.BlockSpec((tm, tk), lambda i, k: (i, k)),
            pl.BlockSpec((tk, Np), lambda i, k: (k, 0)),
        ],
        out_specs=pl.BlockSpec((tm, Np), lambda i, k: (i, 0)),
        out_shape=jax.ShapeDtypeStruct((Mp, Np), jnp.float32),
        scratch_shapes=[pltpu.VMEM((tm, Np), jnp.float32)],
        compiler_params=pltpu.CompilerParams(
            dimension_semantics=("parallel", "arbitrary")),
        cost_estimate=cost,
    )(a_p, w_p)
    return out[:M, :N]


# ---------------------------------------------------------------------------
# Glue: im2col patch extraction (plain-JAX data rearrangement)
# ---------------------------------------------------------------------------
def _im2col(x_nhwc, kh, kw, stride, pad):
    """Tap order (kh, kw, cin) to match the PyTorch OIHW -> HWIO weight reshape."""
    N, H, W, C = x_nhwc.shape
    xp = jnp.pad(x_nhwc, ((0, 0), (pad, pad), (pad, pad), (0, 0)))
    Ho = (H + 2 * pad - kh) // stride + 1
    Wo = (W + 2 * pad - kw) // stride + 1
    cols = []
    for i in range(kh):
        for j in range(kw):
            cols.append(xp[:, i:i + stride * (Ho - 1) + 1:stride,
                              j:j + stride * (Wo - 1) + 1:stride, :])
    patches = jnp.concatenate(cols, axis=-1)          # (N, Ho, Wo, kh*kw*C)
    return patches.reshape(N * Ho * Wo, kh * kw * C), Ho, Wo


# ---------------------------------------------------------------------------
# Logitor forward
# ---------------------------------------------------------------------------
def logitor_forward(x_nchw, c, w1_hwio, w2_hwio):
    """Logitor forward.

    x : (N, ndf*16, H, W) NCHW,  c : (N, ncf) (or any shape reshapable to it)
    w1: (3, 3, ndf*16+ncf, ndf*2) HWIO  -- conv_joint[0], bias-free
    w2: (4, 4, ndf*2, 1)          HWIO  -- conv_joint[2], bias-free
    returns (N, 1, H-3, W-3) NCHW
    """
    N, cx, H, W = x_nchw.shape
    c2 = c.reshape(N, -1)
    ncf = c2.shape[1]
    cin = cx + ncf
    cmid = w1_hwio.shape[-1]

    x = jnp.transpose(x_nchw, (0, 2, 3, 1))                       # NCHW -> NHWC
    c_b = jnp.broadcast_to(c2[:, None, None, :], (N, H, W, ncf))  # spatial repeat
    xc = jnp.concatenate([x, c_b], axis=-1)                       # channel concat

    # conv_joint[0]: 3x3 / s1 / p1, no bias, + fused LeakyReLU(0.2)
    # TODO(synk): at production sizes, stream the 9 conv taps in-kernel
    # (memory_space=pl.ANY + per-tap DMA) instead of materializing im2col in HBM.
    a1, ho, wo = _im2col(xc, 3, 3, 1, 1)
    y1 = pallas_matmul(a1, w1_hwio.reshape(3 * 3 * cin, cmid), leaky=0.2)
    y1 = y1.reshape(N, ho, wo, cmid)

    # conv_joint[2]: 4x4 / s1 / p0, no bias
    a2, ho2, wo2 = _im2col(y1, 4, 4, 1, 0)
    y2 = pallas_matmul(a2, w2_hwio.reshape(4 * 4 * cmid, 1), leaky=None)
    out = y2.reshape(N, ho2, wo2, 1)
    return jnp.transpose(out, (0, 3, 1, 2))                       # back to NCHW


# ---------------------------------------------------------------------------
# Plain-JAX reference (sanity check only)
# ---------------------------------------------------------------------------
def _ref_forward(x, c, w1, w2):
    N, _, H, W = x.shape
    c2 = c.reshape(N, -1)
    c_b = jnp.broadcast_to(c2[:, :, None, None], (N, c2.shape[1], H, W))
    xc = jnp.concatenate([x, c_b], axis=1)
    dn = ("NCHW", "HWIO", "NCHW")
    hp = lax.Precision.HIGHEST
    y = lax.conv_general_dilated(xc, w1, (1, 1), [(1, 1), (1, 1)],
                                 dimension_numbers=dn, precision=hp)
    y = jnp.where(y > 0, y, 0.2 * y)
    return lax.conv_general_dilated(y, w2, (1, 1), [(0, 0), (0, 0)],
                                    dimension_numbers=dn, precision=hp)


# ---------------------------------------------------------------------------
if __name__ == "__main__":
    key = jax.random.PRNGKey(0)
    ndf, ncf = 4, 16
    N, H, W = 2, 16, 16
    cx = ndf * 16            # 64 input feature channels
    cin = cx + ncf           # 80 channels after the c concat
    cmid = ndf * 2           # 8

    k1, k2, kx, kc = jax.random.split(key, 4)
    # conv_joint[0]: Conv2d(cin, cmid, 3, 1, 1, bias=False) -> HWIO (3,3,cin,cmid)
    w1 = 0.1 * jax.random.normal(k1, (3, 3, cin, cmid), jnp.float32)
    # conv_joint[2]: Conv2d(cmid, 1, 4, 1, 0, bias=False)   -> HWIO (4,4,cmid,1)
    w2 = 0.1 * jax.random.normal(k2, (4, 4, cmid, 1), jnp.float32)

    x = jax.random.normal(kx, (N, cx, H, W), jnp.float32)   # NCHW, like PyTorch
    c = jax.random.normal(kc, (N, ncf), jnp.float32)

    out = jax.block_until_ready(logitor_forward(x, c, w1, w2))
    assert out.shape == (N, 1, H - 3, W - 3), out.shape

    ref = _ref_forward(x, c, w1, w2)
    # bf16 MXU inputs with f32 accumulation -> tolerance re-validated vs. the
    # pure-f32 reference (errors observed/expected ~1e-2 at these magnitudes).
    assert jnp.allclose(out, ref, atol=5e-2, rtol=5e-2), \
        float(jnp.max(jnp.abs(out - ref)))

    print("KERNEL_OK")
</pallas_src>

<mosaic_0001>
module attributes {stable_mosaic.version = 11 : i64} {
  func.func @_matmul_kernel(%arg0: i32, %arg1: i32, %arg2: memref<512x384xf32, #tpu.memory_space<vmem>>, %arg3: memref<384x128xf32, #tpu.memory_space<vmem>>, %arg4: memref<512x128xf32, #tpu.memory_space<vmem>>, %arg5: memref<512x128xf32, #tpu.memory_space<vmem>>) attributes {dimension_semantics = [#tpu.dimension_semantics<parallel>, #tpu.dimension_semantics<arbitrary>], iteration_bounds = array<i64: 1, 2>, scalar_prefetch = 0 : i64, scratch_operands = 1 : i64, tpu.core_type = #tpu.core_type<tc>, window_params = [{transform_indices = @transform_0, window_bounds = array<i64: 512, 384>}, {transform_indices = @transform_1, window_bounds = array<i64: 384, 128>}, {transform_indices = @transform_2, window_bounds = array<i64: 512, 128>}]} {
    %c0_i32 = arith.constant 0 : i32
    %0 = arith.cmpi eq, %arg1, %c0_i32 : i32
    %1 = arith.extui %0 : i1 to i32
    %c0_i32_0 = arith.constant 0 : i32
    %2 = arith.cmpi ne, %1, %c0_i32_0 : i32
    scf.if %2 {
      %cst_9 = arith.constant 0.000000e+00 : f32
      %14 = vector.broadcast %cst_9 : f32 to vector<512x128xf32>
      %c0_10 = arith.constant 0 : index
      %c0_11 = arith.constant 0 : index
      %15 = vector.load %arg5[%c0_10, %c0_11] : memref<512x128xf32, #tpu.memory_space<vmem>>, vector<512x128xf32>
      tpu.vector_store %arg5[%c0_10, %c0_11], %14 {strides = array<i32>} : memref<512x128xf32, #tpu.memory_space<vmem>>, vector<512x128xf32>,
    } else {
    }
    %c0 = arith.constant 0 : index
    %c0_1 = arith.constant 0 : index
    %3 = vector.load %arg5[%c0, %c0_1] : memref<512x128xf32, #tpu.memory_space<vmem>>, vector<512x128xf32>
    %c0_2 = arith.constant 0 : index
    %c0_3 = arith.constant 0 : index
    %4 = vector.load %arg2[%c0_2, %c0_3] : memref<512x384xf32, #tpu.memory_space<vmem>>, vector<512x384xf32>
    %5 = arith.truncf %4 : vector<512x384xf32> to vector<512x384xbf16>
    %c0_4 = arith.constant 0 : index
    %c0_5 = arith.constant 0 : index
    %6 = vector.load %arg3[%c0_4, %c0_5] : memref<384x128xf32, #tpu.memory_space<vmem>>, vector<384x128xf32>
    %7 = arith.truncf %6 : vector<384x128xf32> to vector<384x128xbf16>
    %cst = arith.constant dense<0.000000e+00> : vector<512x128xf32>
    %8 = tpu.matmul %5, %7, %cst {dimension_numbers = #tpu.dot_dimension_numbers<[1], [0], [0], [1], [0, 0, 1, 1], [], []>} : vector<512x384xbf16>, vector<384x128xbf16>, vector<512x128xf32> -> vector<512x128xf32>
    %9 = arith.addf %3, %8 : vector<512x128xf32>
    %c0_6 = arith.constant 0 : index
    %c0_7 = arith.constant 0 : index
    %10 = vector.load %arg5[%c0_6, %c0_7] : memref<512x128xf32, #tpu.memory_space<vmem>>, vector<512x128xf32>
    tpu.vector_store %arg5[%c0_6, %c0_7], %9 {strides = array<i32>} : memref<512x128xf32, #tpu.memory_space<vmem>>, vector<512x128xf32>,
    %c1_i32 = arith.constant 1 : i32
    %11 = arith.cmpi eq, %arg1, %c1_i32 : i32
    %12 = arith.extui %11 : i1 to i32
    %c0_i32_8 = arith.constant 0 : i32
    %13 = arith.cmpi ne, %12, %c0_i32_8 : i32
    scf.if %13 {
      %c0_9 = arith.constant 0 : index
      %c0_10 = arith.constant 0 : index
      %14 = vector.load %arg5[%c0_9, %c0_10] : memref<512x128xf32, #tpu.memory_space<vmem>>, vector<512x128xf32>
      %cst_11 = arith.constant 0.000000e+00 : f32
      %15 = vector.broadcast %cst_11 : f32 to vector<512x128xf32>
      %16 = arith.cmpf ogt, %14, %15 : vector<512x128xf32>
      %cst_12 = arith.constant 2.000000e-01 : f32
      %17 = vector.broadcast %cst_12 : f32 to vector<512x128xf32>
      %18 = arith.mulf %17, %14 : vector<512x128xf32>
      %19 = arith.select %16, %14, %18 : vector<512x128xi1>, vector<512x128xf32>
      %c0_13 = arith.constant 0 : index
      %c0_14 = arith.constant 0 : index
      %20 = vector.load %arg4[%c0_13, %c0_14] : memref<512x128xf32, #tpu.memory_space<vmem>>, vector<512x128xf32>
      tpu.vector_store %arg4[%c0_13, %c0_14], %19 {strides = array<i32>} : memref<512x128xf32, #tpu.memory_space<vmem>>, vector<512x128xf32>,
    } else {
    }
    return
  }
  func.func @transform_0(%arg0: i32, %arg1: i32) -> (i32, i32) {
    %c0_i32 = arith.constant 0 : i32
    return %arg0, %arg1 : i32, i32
  }
  func.func @transform_1(%arg0: i32, %arg1: i32) -> (i32, i32) {
    %c0_i32 = arith.constant 0 : i32
    %c0_i32_0 = arith.constant 0 : i32
    return %arg1, %c0_i32 : i32, i32
  }
  func.func @transform_2(%arg0: i32, %arg1: i32) -> (i32, i32) {
    %c0_i32 = arith.constant 0 : i32
    %c0_i32_0 = arith.constant 0 : i32
    return %arg0, %c0_i32 : i32, i32
  }
}

</mosaic_0001>

<bundles_post_ra>
// kernel: tpu_custom_call.1
= control target key start
LH: loop header
LB: loop body
LE: loop exit
PB: predicated region body
PF: predicated region fallthrough
CT: control target
= control target key end

     0   :  { %7 = vsyncpa [#allocation4], 0  ;;  %s2883_s0 = inlined_call_operand.hbm [shape: f32[512,768], index: 0, kind: input, shape index: {}]   ;;  %s2884_s1 = inlined_call_operand.hbm [shape: f32[768,128], index: 1, kind: input, shape index: {}]   ;;  %s2885_s2 = inlined_call_operand.hbm [shape: f32[512,128], index: 2, kind: output, shape index: {}]  }
   0x1   :  { %9 = vsyncpa [#allocation4 + $0x1], 0 }
   0x2   :  { %10 = vsyncpa [#allocation7], 0 }
   0x3   :  { %12 = vsyncpa [#allocation7 + $0x1], 0 }
   0x4   :  { %13 = vsyncpa [#allocation5], 0  ;;  %s2251_s9 = smov 0   ;;  %s2253_s10 = smov 0  }
   0x5   :  { %s2255_s11 = smov 0   ;;  %s2257_s12 = smov 0  }
   0x6   :  { %s2259_s13 = smov 0   ;;  %s2261_s14 = smov 0  }
   0x7 LB: > { %s1838_s15 = sadd.s32 4294967295, %s2222_s14   ;;  %s28_s16 = sadd.s32 1, %s2218_s13  ;;  %s2222_s14 = sphi %s2261_s14, %s19_s14   ;;  %s2218_s13 = sphi %s2259_s13, %s2894_s13   ;;  %s2214_s12 = sphi %s2257_s12, %s2893_s12   ;;  %s2210_s11 = sphi %s2255_s11, %s2892_s11   ;;  %s2206_s10 = sphi %s2253_s10, %s2891_s10   ;;  %s2202_s9 = sphi %s2251_s9, %s2890_s9  }
   0x8   : > { %p29_p0 = scmp.ge.s32.totalorder %s28_s16, 2  ;;  %s40_s17 = sadd.s32 1, %s2210_s11 }
   0x9   : > { %p47_p1 = scmp.ne.s32.totalorder %s2210_s11, %s2206_s10  ;;  %p48_p2 = scmp.eq.s32.totalorder %s2222_s14, 0 }
   0xa   : > { %s2896_s16 = smov (%p29_p0, %s28_s16), 0  ;;  %p53_p4 = scmp.ne.s32.totalorder %s2206_s10, %s2202_s9 }
   0xb   : > { %p49_p3 = por %p48_p2, %p47_p1  ;;  %s36_s18 = ssub.s32 %s2218_s13, %s2896_s16 }
   0xc   : > { %p54_p5 = scmp.eq.s32.totalorder %s1838_s15, 0  ;;  %p38_p6 = scmp.eq.s32.totalorder %s36_s18, 0 }
   0xd   : > { %p2023_p8 = scmp.lt.s32.totalorder %s2222_s14, 2  ;;  %s2301_s21 = sand.u32 1, %s2210_s11  }
   0xe   : > { %p2292_p7 = por %p54_p5, %p53_p4  ;;  %s1850_s22 = smul.u32 384, %s2218_s13 }
   0xf   : > { %s2298_s20 = scalar_select %p38_p6, %s2210_s11, %s40_s17  }
  0x10   : > { %s2004_s23 = smul.u32 1536, %s2301_s21  ;;  %s142_s26 = scalar_lea.hbm %s2883_s0, %s1850_s22 }
  0x11   : > { %p2308_p9 = pnand %p2023_p8, %p49_p3  ;;  %p1843_p10 = scmp.ge.s32.totalorder %s2222_s14, 1 }
  0x12   : > { %s133_s28 = scalar_lea.vmem [#allocation3], %s2004_s23  ;;  %s130_s30 = scalar_lea.sflag [#allocation4], %s2301_s21 }
  0x13   : > { %s143_s29 = sshll.u32 %s133_s28, 4  ;;  %p2086_p11 = pneg %p2308_p9  ;;  %s144_s29 = int_to_ptr.vmem [resolvable:$true] %s143_s29 }
  0x14   : > { %s2097_s3 = scalar_lea.vmem %s144_s29, 24576  ;;  %s2224_s4 = smov [#allocation3]  }
  0x15   : > { %p2098_p12 = scmp.ne.s32.totalorder %s144_s29, %s2097_s3  ;;  %s2102_s5 = sshll.u32 %s2224_s4, 4  ;;  %s2103_s5 = int_to_ptr.vmem [resolvable:$false] %s2102_s5 }
  0x16   : > { %s2104_s6 = scalar_lea.vmem %s2103_s5, 49152  ;;  %p2105_p1 = scmp.lt.s32.totalorder %s144_s29, %s2103_s5 }
  0x17   : > { %p2100_p13 = pnand %p2098_p12, %p2086_p11  ;;  %p2106_p2 = scmp.lt.s32.totalorder %s2104_s6, %s2097_s3 }
  0x19   : > { %p2101_p0 = pneg %p2100_p13  ;;  %p2107_p3 = por %p2106_p2, %p2105_p1 }
  0x1b   : > { %p2108_p4 = pnand %p2107_p3, %p2101_p0 }
  0x1d   : > { %2111 = shalt.err (!%p2108_p4)
}
  0x1e   : > { %s2225_s7 = smov 768   ;;  %s2226_s8 = smov 384  }
  0x1f   : > { %s2227_s9 = smov 24   ;;  %p172_p5 = scmp.lt.s32.totalorder %s2222_s14, 3 }
  0x20   : > { %2019 = dma.hbm_to_vmem [thread:$0]  (!%p2308_p9), %s142_s26, 24576, %s144_s29, %s130_s30, %s2225_s7, %s2226_s8, %s2227_s9  }
  0x21   : > { %s2005_s17 = smul.u32 384, %s2301_s21  ;;  %p2325_p6 = pnand %p1843_p10, %p172_p5 }
  0x22   : > { %s1851_s22 = smul.u32 6144, %s2218_s13  ;;  %s154_s4 = scalar_lea.sflag [#allocation7], %s2301_s21 }
  0x23   : > { %s157_s28 = scalar_lea.vmem [#allocation6], %s2005_s17  ;;  %s2228_s26 = smov [#allocation6]  }
  0x24   : > { %s163_s25 = scalar_lea.hbm %s2884_s1, %s1851_s22  ;;  %s164_s3 = sshll.u32 %s157_s28, 4  ;;  %s165_s3 = int_to_ptr.vmem [resolvable:$true] %s164_s3 }
  0x25   : > { %s2125_s5 = scalar_lea.vmem %s165_s3, 6144  ;;  %s2130_s29 = sshll.u32 %s2228_s26, 4  ;;  %s2131_s29 = int_to_ptr.vmem [resolvable:$false] %s2130_s29 }
  0x26   : > { %p2126_p8 = scmp.ne.s32.totalorder %s165_s3, %s2125_s5  ;;  %s2132_s30 = scalar_lea.vmem %s2131_s29, 12288 }
  0x27   : > { %p2133_p10 = scmp.lt.s32.totalorder %s165_s3, %s2131_s29  ;;  %p2134_p0 = scmp.lt.s32.totalorder %s2132_s30, %s2125_s5 }
  0x28   : > { %p2128_p12 = pnand %p2126_p8, %p2086_p11 }
  0x29   : > { %p2135_p1 = por %p2134_p0, %p2133_p10 }
  0x2a   : > { %p2129_p13 = pneg %p2128_p12 }
  0x2c   : > { %p2136_p2 = pnand %p2135_p1, %p2129_p13 }
  0x2e   : > { %2139 = shalt.err (!%p2136_p2)
}
  0x2f   : > { %s2229_s6 = smov 128   ;;  %s2230_s7 = smov 8  }
  0x30   : > { %2022 = dma.hbm_to_vmem [thread:$0]  (!%p2308_p9), %s163_s25, 6144, %s165_s3, %s154_s4, %s2229_s6, %s2229_s6, %s2230_s7  }
  0x31   : > { %176 = sbr.rel (%p2325_p6) target bundleno = 625 (0x271), region = 28  ;;  %s178_s21 = sand.u32 (!%p2325_p6), 1, %s2206_s10  }
  0x32   : > { %s2006_s8 = smul.u32 (!%p2325_p6), 1536, %s178_s21  ;;  %s179_s9 = scalar_lea.sflag (!%p2325_p6), [#allocation4], %s178_s21 }
  0x34   : > { %s2342_s17 = scalar_lea.vmem (!%p2325_p6), [#allocation3], %s2006_s8 }
  0x36   : > { %2189 = dma.done.wait (%p2292_p7), %s179_s9, 24576  }
  0x37   : > { %2191 = vsyncadd (%p2292_p7), %s179_s9, 4294942720  ;;  %s2007_s22 = smul.u32 384, %s178_s21  ;;  %s188_s23 = scalar_lea.sflag [#allocation7], %s178_s21 }
  0x39   : > { %s2348_s27 = scalar_lea.vmem [#allocation6], %s2007_s22 }
  0x3a   : > { %2193 = dma.done.wait (%p2292_p7), %s188_s23, 6144  }
  0x3b   : > { %2195 = vsyncadd (%p2292_p7), %s188_s23, 4294961152  ;;  %p1844_p9 = scmp.ne.s32.totalorder %s2214_s12, 0 }
  0x3d   : > { %220 = sbr.rel (%p1844_p9) target bundleno = 99 (0x63), region = 40 }
  0x42   : > { %v2231_v0 = vmov 0.0  }
  0x43   : > { %221 = vst [vmem:[#allocation2 + $0xb0] sm:$0xff] %v2231_v0  ;;  %222 = vst [vmem:[#allocation2 + $0x1b0] sm:$0xff] %v2231_v0 }
  0x44   : > { %223 = vst [vmem:[#allocation2 + $0xd8] sm:$0xff] %v2231_v0  ;;  %224 = vst [vmem:[#allocation2 + $0x18] sm:$0xff] %v2231_v0 }
  0x45   : > { %225 = vst [vmem:[#allocation2 + $0x50] sm:$0xff] %v2231_v0  ;;  %226 = vst [vmem:[#allocation2 + $0x168] sm:$0xff] %v2231_v0 }
  0x46   : > { %227 = vst [vmem:[#allocation2 + $0x130] sm:$0xff] %v2231_v0  ;;  %228 = vst [vmem:[#allocation2 + $0x48] sm:$0xff] %v2231_v0 }
  0x47   : > { %229 = vst [vmem:[#allocation2 + $0x180] sm:$0xff] %v2231_v0  ;;  %230 = vst [vmem:[#allocation2 + $0x110] sm:$0xff] %v2231_v0 }
  0x48   : > { %231 = vst [vmem:[#allocation2 + $0x118] sm:$0xff] %v2231_v0  ;;  %232 = vst [vmem:[#allocation2 + $0x98] sm:$0xff] %v2231_v0 }
  0x49   : > { %233 = vst [vmem:[#allocation2 + $0x120] sm:$0xff] %v2231_v0  ;;  %234 = vst [vmem:[#allocation2 + $0x150] sm:$0xff] %v2231_v0 }
  0x4a   : > { %235 = vst [vmem:[#allocation2 + $0x108] sm:$0xff] %v2231_v0  ;;  %236 = vst [vmem:[#allocation2 + $0x60] sm:$0xff] %v2231_v0 }
  0x4b   : > { %237 = vst [vmem:[#allocation2 + $0xe0] sm:$0xff] %v2231_v0  ;;  %238 = vst [vmem:[#allocation2 + $0x188] sm:$0xff] %v2231_v0 }
  0x4c   : > { %239 = vst [vmem:[#allocation2 + $0x138] sm:$0xff] %v2231_v0  ;;  %240 = vst [vmem:[#allocation2 + $0x140] sm:$0xff] %v2231_v0 }
  0x4d   : > { %241 = vst [vmem:[#allocation2 + $0x80] sm:$0xff] %v2231_v0  ;;  %242 = vst [vmem:[#allocation2 + $0x1a8] sm:$0xff] %v2231_v0 }
  0x4e   : > { %243 = vst [vmem:[#allocation2 + $0x1b8] sm:$0xff] %v2231_v0  ;;  %244 = vst [vmem:[#allocation2 + $0x28] sm:$0xff] %v2231_v0 }
  0x4f   : > { %245 = vst [vmem:[#allocation2 + $0x1e8] sm:$0xff] %v2231_v0  ;;  %246 = vst [vmem:[#allocation2 + $0xf8] sm:$0xff] %v2231_v0 }
  0x50   : > { %247 = vst [vmem:[#allocation2 + $0x160] sm:$0xff] %v2231_v0  ;;  %248 = vst [vmem:[#allocation2 + $0x30] sm:$0xff] %v2231_v0 }
  0x51   : > { %249 = vst [vmem:[#allocation2 + $0x1e0] sm:$0xff] %v2231_v0  ;;  %250 = vst [vmem:[#allocation2] sm:$0xff] %v2231_v0 }
  0x52   : > { %251 = vst [vmem:[#allocation2 + $0xf0] sm:$0xff] %v2231_v0  ;;  %252 = vst [vmem:[#allocation2 + $0x8] sm:$0xff] %v2231_v0 }
  0x53   : > { %253 = vst [vmem:[#allocation2 + $0x148] sm:$0xff] %v2231_v0  ;;  %254 = vst [vmem:[#allocation2 + $0x1d0] sm:$0xff] %v2231_v0 }
  0x54   : > { %255 = vst [vmem:[#allocation2 + $0x100] sm:$0xff] %v2231_v0  ;;  %256 = vst [vmem:[#allocation2 + $0xc8] sm:$0xff] %v2231_v0 }
  0x55   : > { %257 = vst [vmem:[#allocation2 + $0x40] sm:$0xff] %v2231_v0  ;;  %258 = vst [vmem:[#allocation2 + $0x1f8] sm:$0xff] %v2231_v0 }
  0x56   : > { %259 = vst [vmem:[#allocation2 + $0x20] sm:$0xff] %v2231_v0  ;;  %260 = vst [vmem:[#allocation2 + $0x128] sm:$0xff] %v2231_v0 }
  0x57   : > { %261 = vst [vmem:[#allocation2 + $0x1a0] sm:$0xff] %v2231_v0  ;;  %262 = vst [vmem:[#allocation2 + $0x1f0] sm:$0xff] %v2231_v0 }
  0x58   : > { %263 = vst [vmem:[#allocation2 + $0xe8] sm:$0xff] %v2231_v0  ;;  %264 = vst [vmem:[#allocation2 + $0x78] sm:$0xff] %v2231_v0 }
  0x59   : > { %265 = vst [vmem:[#allocation2 + $0x70] sm:$0xff] %v2231_v0  ;;  %266 = vst [vmem:[#allocation2 + $0x90] sm:$0xff] %v2231_v0 }
  0x5a   : > { %267 = vst [vmem:[#allocation2 + $0x1d8] sm:$0xff] %v2231_v0  ;;  %268 = vst [vmem:[#allocation2 + $0xd0] sm:$0xff] %v2231_v0 }
  0x5b   : > { %269 = vst [vmem:[#allocation2 + $0xb8] sm:$0xff] %v2231_v0  ;;  %270 = vst [vmem:[#allocation2 + $0x88] sm:$0xff] %v2231_v0 }
  0x5c   : > { %271 = vst [vmem:[#allocation2 + $0xa8] sm:$0xff] %v2231_v0  ;;  %272 = vst [vmem:[#allocation2 + $0x1c8] sm:$0xff] %v2231_v0 }
  0x5d   : > { %273 = vst [vmem:[#allocation2 + $0x170] sm:$0xff] %v2231_v0  ;;  %274 = vst [vmem:[#allocation2 + $0x178] sm:$0xff] %v2231_v0 }
  0x5e   : > { %275 = vst [vmem:[#allocation2 + $0x68] sm:$0xff] %v2231_v0  ;;  %276 = vst [vmem:[#allocation2 + $0x190] sm:$0xff] %v2231_v0 }
  0x5f   : > { %277 = vst [vmem:[#allocation2 + $0x198] sm:$0xff] %v2231_v0  ;;  %278 = vst [vmem:[#allocation2 + $0x38] sm:$0xff] %v2231_v0 }
  0x60   : > { %279 = vst [vmem:[#allocation2 + $0xc0] sm:$0xff] %v2231_v0  ;;  %280 = vst [vmem:[#allocation2 + $0x1c0] sm:$0xff] %v2231_v0 }
  0x61   : > { %281 = vst [vmem:[#allocation2 + $0x158] sm:$0xff] %v2231_v0  ;;  %282 = vst [vmem:[#allocation2 + $0x10] sm:$0xff] %v2231_v0 }
  0x62   : > { %283 = vst [vmem:[#allocation2 + $0x58] sm:$0xff] %v2231_v0  ;;  %284 = vst [vmem:[#allocation2 + $0xa0] sm:$0xff] %v2231_v0 }
  0x63 PF: > { %v651_v1 = vld [vmem:[%s2348_s27 + $0x70] sm:$0xff]  ;;  %v652_v2 = vld [vmem:[%s2348_s27 + $0x78] sm:$0xff]  ;;  %v649_v3 = vld [vmem:[%s2348_s27 + $0x60] sm:$0xff]  ;;  %v2232_v4 = vmov 0   ;;  %p1845_p7 = scmp.ne.s32.totalorder %s2214_s12, 1 }
  0x64   : > { %709 = vmatprep.subr.bf16.mxu0 %v2232_v4  ;;  %1972 = vmatprep.subr.bf16.mxu1 %v2232_v4  ;;  %v692_v5 = vpack.c.bf16 %v652_v2, %v651_v1  ;;  %v650_v6 = vld [vmem:[%s2348_s27 + $0x68] sm:$0xff]  ;;  %v647_v8 = vld [vmem:[%s2348_s27 + $0x50] sm:$0xff]  ;;  %v648_v9 = vld [vmem:[%s2348_s27 + $0x58] sm:$0xff] }
  0x65   : > { %v691_v7 = vpack.c.bf16 %v650_v6, %v649_v3  ;;  %v690_v10 = vpack.c.bf16 %v648_v9, %v647_v8  ;;  %v645_v11 = vld [vmem:[%s2348_s27 + $0x40] sm:$0xff]  ;;  %v646_v12 = vld [vmem:[%s2348_s27 + $0x48] sm:$0xff]  ;;  %v643_v18 = vld [vmem:[%s2348_s27 + $0x30] sm:$0xff] }
  0x66   : > { %710 = vmatpush1.bf16.msra.mxu0 %v692_v5  ;;  %1988 = vmatpush1.bf16.msra.mxu1 %v692_v5  ;;  %v350_v13 = vld [vmem:[%s2342_s17 + $0x8] sm:$0xff]  ;;  %v689_v14 = vpack.c.bf16 %v646_v12, %v645_v11  ;;  %v353_v15 = vld [vmem:[%s2342_s17 + $0x20] sm:$0xff]  ;;  %v644_v19 = vld [vmem:[%s2348_s27 + $0x38] sm:$0xff] }
  0x67   : > { %711 = vmatprep.subr.bf16.mxu0 %v2232_v4  ;;  %1973 = vmatprep.subr.bf16.mxu1 %v2232_v4  ;;  %v494_v16 = vld [vmem:[%s2342_s17 + $0x488] sm:$0xff]  ;;  %v497_v17 = vld [vmem:[%s2342_s17 + $0x4a0] sm:$0xff]  ;;  %v542_v20 = vpack.c.bf16 %v353_v15, %v350_v13  ;;  %v688_v22 = vpack.c.bf16 %v644_v19, %v643_v18  ;;  %v639_v26 = vld [vmem:[%s2348_s27 + $0x10] sm:$0xff] }
  0x68   : > { %v614_v21 = vpack.c.bf16 %v497_v17, %v494_v16  ;;  %v641_v23 = vld [vmem:[%s2348_s27 + $0x20] sm:$0xff]  ;;  %v642_v24 = vld [vmem:[%s2348_s27 + $0x28] sm:$0xff]  ;;  %v640_v27 = vld [vmem:[%s2348_s27 + $0x18] sm:$0xff] }
  0x69   : > { %741 = vmatprep.mubr.bf16.mxu0 %v542_v20  ;;  %v687_v25 = vpack.c.bf16 %v642_v24, %v641_v23  ;;  %v686_v28 = vpack.c.bf16 %v640_v27, %v639_v26  ;;  %v637_v29 = vld [vmem:[%s2348_s27] sm:$0xff]  ;;  %v638_v30 = vld [vmem:[%s2348_s27 + $0x8] sm:$0xff]  ;;  %v667_v32 = vld [vmem:[%s2348_s27 + $0xf0] sm:$0xff] }
  0x6a   : > { %712 = vmatpush1.bf16.msra.mxu0 %v691_v7  ;;  %1989 = vmatpush1.bf16.msra.mxu1 %v691_v7  ;;  %v685_v31 = vpack.c.bf16 %v638_v30, %v637_v29  ;;  %v668_v33 = vld [vmem:[%s2348_s27 + $0xf8] sm:$0xff]  ;;  %v665_v35 = vld [vmem:[%s2348_s27 + $0xe0] sm:$0xff]  ;;  %v666_v36 = vld [vmem:[%s2348_s27 + $0xe8] sm:$0xff] }
  0x6b   : > { %713 = vmatprep.subr.bf16.mxu0 %v2232_v4  ;;  %1974 = vmatprep.subr.bf16.mxu1 %v2232_v4  ;;  %v700_v34 = vpack.c.bf16 %v668_v33, %v667_v32  ;;  %v699_v37 = vpack.c.bf16 %v666_v36, %v665_v35  ;;  %v663_v38 = vld [vmem:[%s2348_s27 + $0xd0] sm:$0xff]  ;;  %v664_v39 = vld [vmem:[%s2348_s27 + $0xd8] sm:$0xff]  ;;  %v661_v41 = vld [vmem:[%s2348_s27 + $0xc0] sm:$0xff] }
  0x6c   : > { %933 = vmatprep.mubr.bf16.mxu1 %v614_v21  ;;  %v698_v40 = vpack.c.bf16 %v664_v39, %v663_v38  ;;  %v662_v42 = vld [vmem:[%s2348_s27 + $0xc8] sm:$0xff]  ;;  %v659_v44 = vld [vmem:[%s2348_s27 + $0xb0] sm:$0xff]  ;;  %v660_v45 = vld [vmem:[%s2348_s27 + $0xb8] sm:$0xff] }
  0x6d   : > { %v697_v43 = vpack.c.bf16 %v662_v42, %v661_v41  ;;  %v696_v46 = vpack.c.bf16 %v660_v45, %v659_v44  ;;  %v657_v47 = vld [vmem:[%s2348_s27 + $0xa0] sm:$0xff]  ;;  %v658_v48 = vld [vmem:[%s2348_s27 + $0xa8] sm:$0xff]  ;;  %v655_v50 = vld [vmem:[%s2348_s27 + $0x90] sm:$0xff] }
  0x6e   : > { %714 = vmatpush1.bf16.msra.mxu0 %v690_v10  ;;  %1990 = vmatpush1.bf16.msra.mxu1 %v690_v10  ;;  %v695_v49 = vpack.c.bf16 %v658_v48, %v657_v47  ;;  %v656_v51 = vld [vmem:[%s2348_s27 + $0x98] sm:$0xff]  ;;  %v653_v53 = vld [vmem:[%s2348_s27 + $0x80] sm:$0xff]  ;;  %v654_v54 = vld [vmem:[%s2348_s27 + $0x88] sm:$0xff] }
  0x6f   : > { %715 = vmatprep.subr.bf16.mxu0 %v2232_v4  ;;  %1975 = vmatprep.subr.bf16.mxu1 %v2232_v4  ;;  %v694_v52 = vpack.c.bf16 %v656_v51, %v655_v50  ;;  %v683_v55 = vld [vmem:[%s2348_s27 + $0x170] sm:$0xff]  ;;  %v684_v56 = vld [vmem:[%s2348_s27 + $0x178] sm:$0xff]  ;;  %v349_v57 = vld [vmem:[%s2342_s17] sm:$0xff]  ;;  %v693_v58 = vpack.c.bf16 %v654_v54, %v653_v53 }
  0x70   : > { %v352_v59 = vld [vmem:[%s2342_s17 + $0x18] sm:$0xff]  ;;  %v493_v60 = vld [vmem:[%s2342_s17 + $0x480] sm:$0xff]  ;;  %v708_v62 = vpack.c.bf16 %v684_v56, %v683_v55  ;;  %v359_v0 = vld [vmem:[%s2342_s17 + $0x50] sm:$0xff] }
  0x71   : > { %v496_v61 = vld [vmem:[%s2342_s17 + $0x498] sm:$0xff]  ;;  %v503_v2 = vld [vmem:[%s2342_s17 + $0x4d0] sm:$0xff]  ;;  %v681_v3 = vld [vmem:[%s2348_s27 + $0x160] sm:$0xff]  ;;  %v541_v6 = vpack.c.bf16 %v352_v59, %v349_v57 }
  0x72   : > { %716 = vmatpush1.bf16.msra.mxu0 %v689_v14  ;;  %1991 = vmatpush1.bf16.msra.mxu1 %v689_v14  ;;  %v356_v63 = vld [vmem:[%s2342_s17 + $0x38] sm:$0xff]  ;;  %v682_v5 = vld [vmem:[%s2348_s27 + $0x168] sm:$0xff]  ;;  %v613_v7 = vpack.c.bf16 %v496_v61, %v493_v60  ;;  %v679_v10 = vld [vmem:[%s2348_s27 + $0x150] sm:$0xff] }
  0x73   : > { %717 = vmatprep.subr.bf16.mxu0 %v2232_v4  ;;  %1976 = vmatprep.subr.bf16.mxu1 %v2232_v4  ;;  %v500_v1 = vld [vmem:[%s2342_s17 + $0x4b8] sm:$0xff]  ;;  %v545_v8 = vpack.c.bf16 %v359_v0, %v356_v63  ;;  %v707_v9 = vpack.c.bf16 %v682_v5, %v681_v3  ;;  %v355_v12 = vld [vmem:[%s2342_s17 + $0x30] sm:$0xff]  ;;  %v358_v13 = vld [vmem:[%s2342_s17 + $0x48] sm:$0xff] }
  0x74   : > { %v680_v11 = vld [vmem:[%s2348_s27 + $0x158] sm:$0xff]  ;;  %v499_v14 = vld [vmem:[%s2342_s17 + $0x4b0] sm:$0xff]  ;;  %v502_v15 = vld [vmem:[%s2342_s17 + $0x4c8] sm:$0xff]  ;;  %v544_v21 = vpack.c.bf16 %v358_v13, %v355_v12 }
  0x75   : > { %v362_v16 = vld [vmem:[%s2342_s17 + $0x68] sm:$0xff]  ;;  %v365_v17 = vld [vmem:[%s2342_s17 + $0x80] sm:$0xff]  ;;  %v706_v20 = vpack.c.bf16 %v680_v11, %v679_v10  ;;  %v364_v29 = vld [vmem:[%s2342_s17 + $0x78] sm:$0xff] }
  0x76   : > { %718 = vmatpush1.bf16.msra.mxu0 %v688_v22  ;;  %1992 = vmatpush1.bf16.msra.mxu1 %v688_v22  ;;  %v506_v18 = vld [vmem:[%s2342_s17 + $0x4e8] sm:$0xff]  ;;  %v509_v19 = vld [vmem:[%s2342_s17 + $0x500] sm:$0xff]  ;;  %v616_v22 = vpack.c.bf16 %v502_v15, %v499_v14  ;;  %v675_v30 = vld [vmem:[%s2348_s27 + $0x130] sm:$0xff] }
  0x77   : > { %719 = vmatprep.subr.bf16.mxu0 %v2232_v4  ;;  %1977 = vmatprep.subr.bf16.mxu1 %v2232_v4  ;;  %v677_v23 = vld [vmem:[%s2348_s27 + $0x140] sm:$0xff]  ;;  %v678_v24 = vld [vmem:[%s2348_s27 + $0x148] sm:$0xff]  ;;  %v620_v26 = vpack.c.bf16 %v509_v19, %v506_v18  ;;  %v508_v33 = vld [vmem:[%s2342_s17 + $0x4f8] sm:$0xff] }
  0x78   : > { %v361_v27 = vld [vmem:[%s2342_s17 + $0x60] sm:$0xff]  ;;  %v371_v35 = vld [vmem:[%s2342_s17 + $0xb0] sm:$0xff]  ;;  %v512_v36 = vld [vmem:[%s2342_s17 + $0x518] sm:$0xff] }
  0x79   : > { %v505_v32 = vld [vmem:[%s2342_s17 + $0x4e0] sm:$0xff]  ;;  %v547_v39 = vpack.c.bf16 %v364_v29, %v361_v27  ;;  %v674_v42 = vld [vmem:[%s2348_s27 + $0x128] sm:$0xff]  ;;  %v367_v45 = vld [vmem:[%s2342_s17 + $0x90] sm:$0xff] }
  0x7a   : > { %720 = vmatpush1.bf16.msra.mxu0 %v687_v25  ;;  %1993 = vmatpush1.bf16.msra.mxu1 %v687_v25  ;;  %v548_v25 = vpack.c.bf16 %v365_v17, %v362_v16  ;;  %v673_v41 = vld [vmem:[%s2348_s27 + $0x120] sm:$0xff]  ;;  %v370_v47 = vld [vmem:[%s2342_s17 + $0xa8] sm:$0xff]  ;;  %v671_v48 = vld [vmem:[%s2348_s27 + $0x110] sm:$0xff] }
  0x7b   : > { %721 = vmatprep.subr.bf16.mxu0 %v2232_v4  ;;  %1978 = vmatprep.subr.bf16.mxu1 %v2232_v4  ;;  %v511_v50 = vld [vmem:[%s2342_s17 + $0x510] sm:$0xff]  ;;  %v514_v51 = vld [vmem:[%s2342_s17 + $0x528] sm:$0xff]  ;;  %v377_v53 = vld [vmem:[%s2342_s17 + $0xe0] sm:$0xff]  ;;  %v550_v57 = vpack.c.bf16 %v370_v47, %v367_v45 }
  0x7c   : > { %v518_v54 = vld [vmem:[%s2342_s17 + $0x548] sm:$0xff]  ;;  %v521_v55 = vld [vmem:[%s2342_s17 + $0x560] sm:$0xff]  ;;  %v520_v3 = vld [vmem:[%s2342_s17 + $0x558] sm:$0xff] }
  0x7d   : > { %v669_v59 = vld [vmem:[%s2348_s27 + $0x100] sm:$0xff]  ;;  %v670_v60 = vld [vmem:[%s2348_s27 + $0x108] sm:$0xff]  ;;  %v380_v5 = vld [vmem:[%s2342_s17 + $0xf8] sm:$0xff] }
  0x7e   : > { %722 = vmatpush1.bf16.msra.mxu0 %v686_v28  ;;  %1994 = vmatpush1.bf16.msra.mxu1 %v686_v28  ;;  %v705_v28 = vpack.c.bf16 %v678_v24, %v677_v23  ;;  %v701_v63 = vpack.c.bf16 %v670_v60, %v669_v59  ;;  %v373_v0 = vld [vmem:[%s2342_s17 + $0xc0] sm:$0xff]  ;;  %v379_v12 = vld [vmem:[%s2342_s17 + $0xf0] sm:$0xff]  ;;  %v382_v13 = vld [vmem:[%s2342_s17 + $0x108] sm:$0xff] }
  0x7f   : > { %723 = vmatprep.subr.bf16.mxu0 %v2232_v4  ;;  %1979 = vmatprep.subr.bf16.mxu1 %v2232_v4  ;;  %v523_v14 = vld [vmem:[%s2342_s17 + $0x570] sm:$0xff]  ;;  %v526_v15 = vld [vmem:[%s2342_s17 + $0x588] sm:$0xff]  ;;  %v389_v17 = vld [vmem:[%s2342_s17 + $0x140] sm:$0xff] }
  0x80   : > { %v386_v16 = vld [vmem:[%s2342_s17 + $0x128] sm:$0xff]  ;;  %v533_v19 = vld [vmem:[%s2342_s17 + $0x5c0] sm:$0xff]  ;;  %v532_v27 = vld [vmem:[%s2342_s17 + $0x5b8] sm:$0xff] }
  0x81   : > { %v530_v18 = vld [vmem:[%s2342_s17 + $0x5a8] sm:$0xff]  ;;  %v385_v24 = vld [vmem:[%s2342_s17 + $0x120] sm:$0xff]  ;;  %v395_v29 = vld [vmem:[%s2342_s17 + $0x170] sm:$0xff] }
  0x82   : > { %724 = vmatpush1.bf16.msra.mxu0 %v685_v31  ;;  %1995 = vmatpush1.bf16.msra.mxu1 %v685_v31  ;;  %v676_v31 = vld [vmem:[%s2348_s27 + $0x138] sm:$0xff]  ;;  %v632_v23 = vpack.c.bf16 %v533_v19, %v530_v18  ;;  %v403_v60 = vld [vmem:[%s2342_s17 + $0x1b0] sm:$0xff] }
  0x83   : > { %725 = vmatprep.subr.bf16.mxu0 %v2232_v4  ;;  %1980 = vmatprep.subr.bf16.mxu1 %v2232_v4  ;;  %v704_v38 = vpack.c.bf16 %v676_v31, %v675_v30  ;;  %v536_v30 = vld [vmem:[%s2342_s17 + $0x5d8] sm:$0xff]  ;;  %v539_v31 = vld [vmem:[%s2342_s17 + $0x5f0] sm:$0xff] }
  0x86   : > { %726 = vmatpush2.bf16.msra.mxu0 %v700_v34  ;;  %1996 = vmatpush2.bf16.msra.mxu1 %v700_v34  ;;  %v368_v34 = vld [vmem:[%s2342_s17 + $0x98] sm:$0xff] }
  0x87   : > { %727 = vmatprep.subr.bf16.mxu0 %v2232_v4  ;;  %1981 = vmatprep.subr.bf16.mxu1 %v2232_v4 }
  0x8a   : > { %728 = vmatpush2.bf16.msra.mxu0 %v699_v37  ;;  %1997 = vmatpush2.bf16.msra.mxu1 %v699_v37  ;;  %v515_v37 = vld [vmem:[%s2342_s17 + $0x530] sm:$0xff] }
  0x8b   : > { %729 = vmatprep.subr.bf16.mxu0 %v2232_v4  ;;  %1982 = vmatprep.subr.bf16.mxu1 %v2232_v4  ;;  %v623_v44 = vpack.c.bf16 %v515_v37, %v512_v36  ;;  %v391_v36 = vld [vmem:[%s2342_s17 + $0x150] sm:$0xff]  ;;  %v394_v37 = vld [vmem:[%s2342_s17 + $0x168] sm:$0xff] }
  0x8e   : > { %730 = vmatpush2.bf16.msra.mxu0 %v698_v40  ;;  %1998 = vmatpush2.bf16.msra.mxu1 %v698_v40  ;;  %v619_v40 = vpack.c.bf16 %v508_v33, %v505_v32 }
  0x8f   : > { %731 = vmatprep.subr.bf16.mxu0 %v2232_v4  ;;  %1983 = vmatprep.subr.bf16.mxu1 %v2232_v4 }
  0x92   : > { %732 = vmatpush2.bf16.msra.mxu0 %v697_v43  ;;  %1999 = vmatpush2.bf16.msra.mxu1 %v697_v43  ;;  %v551_v43 = vpack.c.bf16 %v371_v35, %v368_v34  ;;  %v635_v35 = vpack.c.bf16 %v539_v31, %v536_v30 }
  0x93   : > { %733 = vmatprep.subr.bf16.mxu0 %v2232_v4  ;;  %1984 = vmatprep.subr.bf16.mxu1 %v2232_v4 }
  0x96   : > { %734 = vmatpush2.bf16.msra.mxu0 %v696_v46  ;;  %2000 = vmatpush2.bf16.msra.mxu1 %v696_v46  ;;  %v703_v46 = vpack.c.bf16 %v674_v42, %v673_v41  ;;  %v401_v41 = vld [vmem:[%s2342_s17 + $0x1a0] sm:$0xff]  ;;  %v351_v42 = vld [vmem:[%s2342_s17 + $0x10] sm:$0xff] }
  0x97   : > { %735 = vmatprep.subr.bf16.mxu0 %v2232_v4  ;;  %1985 = vmatprep.subr.bf16.mxu1 %v2232_v4 }
  0x9a   : > { %736 = vmatpush2.bf16.msra.mxu0 %v695_v49  ;;  %2001 = vmatpush2.bf16.msra.mxu1 %v695_v49  ;;  %v672_v49 = vld [vmem:[%s2348_s27 + $0x118] sm:$0xff] }
  0x9b   : > { %737 = vmatprep.subr.bf16.mxu0 %v2232_v4  ;;  %1986 = vmatprep.subr.bf16.mxu1 %v2232_v4  ;;  %v702_v56 = vpack.c.bf16 %v672_v49, %v671_v48  ;;  %v397_v48 = vld [vmem:[%s2342_s17 + $0x180] sm:$0xff]  ;;  %v400_v49 = vld [vmem:[%s2342_s17 + $0x198] sm:$0xff] }
  0x9e   : > { %738 = vmatpush2.bf16.msra.mxu0 %v694_v52  ;;  %2002 = vmatpush2.bf16.msra.mxu1 %v694_v52  ;;  %v374_v52 = vld [vmem:[%s2342_s17 + $0xc8] sm:$0xff] }
  0x9f   : > { %739 = vmatprep.subr.bf16.mxu0 %v2232_v4  ;;  %1987 = vmatprep.subr.bf16.mxu1 %v2232_v4  ;;  %v617_v4 = vpack.c.bf16 %v503_v2, %v500_v1  ;;  %v554_v61 = vpack.c.bf16 %v377_v53, %v374_v52  ;;  %v376_v1 = vld [vmem:[%s2342_s17 + $0xd8] sm:$0xff]  ;;  %v517_v2 = vld [vmem:[%s2342_s17 + $0x540] sm:$0xff]  ;;  %v407_v53 = vld [vmem:[%s2342_s17 + $0x1d0] sm:$0xff] }
  0xa0   : > { %v404_v52 = vld [vmem:[%s2342_s17 + $0x1b8] sm:$0xff] }
  0xa2   : > { %740 = vmatpush2.bf16.msra.mxu0 %v693_v58  ;;  %2003 = vmatpush2.bf16.msra.mxu1 %v693_v58  ;;  %v622_v58 = vpack.c.bf16 %v514_v51, %v511_v50  ;;  %v357_v50 = vld [vmem:[%s2342_s17 + $0x40] sm:$0xff]  ;;  %v360_v51 = vld [vmem:[%s2342_s17 + $0x58] sm:$0xff] }
  0xa3   : > { %1892 = vmatprep.subr.bf16.mxu1 %v708_v62 }
  0xa5   : > { %742 = vmatmul.mubr.bf16.vlgmr.msra.gmra.mxu0 %v541_v6  ;;  %934 = vmatmul.mubr.bf16.vlgmr.msra.gmra.mxu1 %v613_v7  ;;  %v383_v6 = vld [vmem:[%s2342_s17 + $0x110] sm:$0xff]  ;;  %v524_v7 = vld [vmem:[%s2342_s17 + $0x578] sm:$0xff] }
  0xa6   : > { %1893 = vmatpush3.bf16.msra.mxu1 %v708_v62  ;;  %749 = vmatprep.mubr.bf16.mxu0 %v545_v8  ;;  %v626_v62 = vpack.c.bf16 %v521_v55, %v518_v54  ;;  %v527_v8 = vld [vmem:[%s2342_s17 + $0x590] sm:$0xff]  ;;  %v557_v10 = vpack.c.bf16 %v383_v6, %v380_v5  ;;  %v366_v55 = vld [vmem:[%s2342_s17 + $0x88] sm:$0xff] }
  0xa7   : > { %941 = vmatprep.mubr.bf16.mxu1 %v617_v4  ;;  %1894 = vmatprep.subr.bf16.mxu1 %v707_v9  ;;  %v553_v4 = vpack.c.bf16 %v376_v1, %v373_v0  ;;  %v629_v11 = vpack.c.bf16 %v527_v8, %v524_v7  ;;  %v363_v54 = vld [vmem:[%s2342_s17 + $0x70] sm:$0xff]  ;;  %v410_v0 = vld [vmem:[%s2342_s17 + $0x1e8] sm:$0xff]  ;;  %v413_v1 = vld [vmem:[%s2342_s17 + $0x200] sm:$0xff] }
  0xa8   : > { %v549_v59 = vpack.c.bf16 %v366_v55, %v363_v54  ;;  %v572_v7 = vpack.c.bf16 %v413_v1, %v410_v0 }
  0xaa   : > { %1895 = vmatpush3.bf16.msra.mxu1 %v707_v9  ;;  %v625_v9 = vpack.c.bf16 %v520_v3, %v517_v2  ;;  %v375_v2 = vld [vmem:[%s2342_s17 + $0xd0] sm:$0xff]  ;;  %v378_v3 = vld [vmem:[%s2342_s17 + $0xe8] sm:$0xff] }
  0xab   : > { %1896 = vmatprep.subr.bf16.mxu1 %v706_v20  ;;  %v555_v8 = vpack.c.bf16 %v378_v3, %v375_v2 }
  0xad   : > { %750 = vmatmul.mubr.bf16.gmra.mxu0 %v544_v21  ;;  %942 = vmatmul.mubr.bf16.gmra.mxu1 %v616_v22  ;;  %v628_v21 = vpack.c.bf16 %v526_v15, %v523_v14  ;;  %v560_v22 = vpack.c.bf16 %v389_v17, %v386_v16  ;;  %v387_v14 = vld [vmem:[%s2342_s17 + $0x130] sm:$0xff]  ;;  %v390_v15 = vld [vmem:[%s2342_s17 + $0x148] sm:$0xff] }
  0xae   : > { %757 = vmatprep.mubr.bf16.mxu0 %v548_v25  ;;  %949 = vmatprep.mubr.bf16.mxu1 %v620_v26  ;;  %v388_v25 = vld [vmem:[%s2342_s17 + $0x138] sm:$0xff]  ;;  %v529_v26 = vld [vmem:[%s2342_s17 + $0x5a0] sm:$0xff]  ;;  %v561_v19 = vpack.c.bf16 %v390_v15, %v387_v14 }
  0xaf   : > { %1897 = vmatpush3.bf16.msra.mxu1 %v706_v20  ;;  %v556_v20 = vpack.c.bf16 %v382_v13, %v379_v12  ;;  %v559_v32 = vpack.c.bf16 %v388_v25, %v385_v24  ;;  %v631_v33 = vpack.c.bf16 %v532_v27, %v529_v26  ;;  %v416_v12 = vld [vmem:[%s2342_s17 + $0x218] sm:$0xff]  ;;  %v419_v13 = vld [vmem:[%s2342_s17 + $0x230] sm:$0xff]  ;;  %v422_v24 = vld [vmem:[%s2342_s17 + $0x248] sm:$0xff] }
  0xb0   : > { %1898 = vmatprep.subr.bf16.mxu1 %v705_v28  ;;  %v575_v18 = vpack.c.bf16 %v419_v13, %v416_v12  ;;  %v425_v25 = vld [vmem:[%s2342_s17 + $0x260] sm:$0xff]  ;;  %v399_v26 = vld [vmem:[%s2342_s17 + $0x190] sm:$0xff]  ;;  %v402_v27 = vld [vmem:[%s2342_s17 + $0x1a8] sm:$0xff] }
  0xb1   : > { %v578_v30 = vpack.c.bf16 %v425_v25, %v422_v24  ;;  %v567_v31 = vpack.c.bf16 %v402_v27, %v399_v26 }
  0xb3   : > { %1899 = vmatpush3.bf16.msra.mxu1 %v705_v28  ;;  %v392_v28 = vld [vmem:[%s2342_s17 + $0x158] sm:$0xff] }
  0xb4   : > { %1900 = vmatprep.subr.bf16.mxu1 %v704_v38  ;;  %v563_v34 = vpack.c.bf16 %v395_v29, %v392_v28 }
  0xb5   : > { %758 = vmatmul.mubr.bf16.gmra.mxu0 %v547_v39  ;;  %950 = vmatmul.mubr.bf16.gmra.mxu1 %v619_v40  ;;  %v538_v39 = vld [vmem:[%s2342_s17 + $0x5e8] sm:$0xff] }
  0xb6   : > { %765 = vmatprep.mubr.bf16.mxu0 %v551_v43  ;;  %957 = vmatprep.mubr.bf16.mxu1 %v623_v44  ;;  %v398_v40 = vld [vmem:[%s2342_s17 + $0x188] sm:$0xff]  ;;  %v562_v44 = vpack.c.bf16 %v394_v37, %v391_v36  ;;  %v428_v36 = vld [vmem:[%s2342_s17 + $0x278] sm:$0xff]  ;;  %v431_v37 = vld [vmem:[%s2342_s17 + $0x290] sm:$0xff] }
  0xb7   : > { %1901 = vmatpush3.bf16.msra.mxu1 %v704_v38  ;;  %v535_v38 = vld [vmem:[%s2342_s17 + $0x5d0] sm:$0xff]  ;;  %v354_v43 = vld [vmem:[%s2342_s17 + $0x28] sm:$0xff] }
  0xb8   : > { %1902 = vmatprep.subr.bf16.mxu1 %v703_v46  ;;  %v634_v45 = vpack.c.bf16 %v538_v39, %v535_v38  ;;  %v543_v47 = vpack.c.bf16 %v354_v43, %v351_v42  ;;  %v411_v38 = vld [vmem:[%s2342_s17 + $0x1f0] sm:$0xff]  ;;  %v414_v39 = vld [vmem:[%s2342_s17 + $0x208] sm:$0xff]  ;;  %v581_v42 = vpack.c.bf16 %v431_v37, %v428_v36 }
  0xb9   : > { %v573_v43 = vpack.c.bf16 %v414_v39, %v411_v38 }
  0xbb   : > { %1903 = vmatpush3.bf16.msra.mxu1 %v703_v46  ;;  %v566_v46 = vpack.c.bf16 %v401_v41, %v398_v40 }
  0xbc   : > { %1904 = vmatprep.subr.bf16.mxu1 %v702_v56 }
  0xbd   : > { %766 = vmatmul.mubr.bf16.gmra.mxu0 %v550_v57  ;;  %958 = vmatmul.mubr.bf16.gmra.mxu1 %v622_v58  ;;  %v546_v57 = vpack.c.bf16 %v360_v51, %v357_v50  ;;  %v569_v58 = vpack.c.bf16 %v407_v53, %v404_v52  ;;  %v423_v50 = vld [vmem:[%s2342_s17 + $0x250] sm:$0xff]  ;;  %v426_v51 = vld [vmem:[%s2342_s17 + $0x268] sm:$0xff] }
  0xbe   : > { %773 = vmatprep.mubr.bf16.mxu0 %v554_v61  ;;  %965 = vmatprep.mubr.bf16.mxu1 %v626_v62  ;;  %v406_v61 = vld [vmem:[%s2342_s17 + $0x1c8] sm:$0xff]  ;;  %v369_v62 = vld [vmem:[%s2342_s17 + $0xa0] sm:$0xff]  ;;  %v579_v55 = vpack.c.bf16 %v426_v51, %v423_v50 }
  0xbf   : > { %1905 = vmatpush3.bf16.msra.mxu1 %v702_v56  ;;  %v565_v56 = vpack.c.bf16 %v400_v49, %v397_v48  ;;  %v568_v5 = vpack.c.bf16 %v406_v61, %v403_v60  ;;  %v434_v48 = vld [vmem:[%s2342_s17 + $0x2a8] sm:$0xff]  ;;  %v437_v49 = vld [vmem:[%s2342_s17 + $0x2c0] sm:$0xff]  ;;  %v440_v60 = vld [vmem:[%s2342_s17 + $0x2d8] sm:$0xff] }
  0xc0   : > { %1906 = vmatprep.subr.bf16.mxu1 %v701_v63  ;;  %v584_v54 = vpack.c.bf16 %v437_v49, %v434_v48  ;;  %v443_v61 = vld [vmem:[%s2342_s17 + $0x2f0] sm:$0xff] }
  0xc1   : > { %v587_v2 = vpack.c.bf16 %v443_v61, %v440_v60 }
  0xc3   : > { %1907 = vmatpush3.bf16.msra.mxu1 %v701_v63  ;;  %v372_v63 = vld [vmem:[%s2342_s17 + $0xb8] sm:$0xff] }
  0xc4   : > { %v552_v6 = vpack.c.bf16 %v372_v63, %v369_v62  ;;  %v435_v62 = vld [vmem:[%s2342_s17 + $0x2b0] sm:$0xff]  ;;  %v438_v63 = vld [vmem:[%s2342_s17 + $0x2c8] sm:$0xff] }
  0xc5   : > { %774 = vmatmul.mubr.bf16.gmra.mxu0 %v553_v4  ;;  %966 = vmatmul.mubr.bf16.gmra.mxu1 %v625_v9  ;;  %v409_v4 = vld [vmem:[%s2342_s17 + $0x1e0] sm:$0xff]  ;;  %v412_v9 = vld [vmem:[%s2342_s17 + $0x1f8] sm:$0xff]  ;;  %v585_v3 = vpack.c.bf16 %v438_v63, %v435_v62 }
  0xc6   : > { %781 = vmatprep.mubr.bf16.mxu0 %v557_v10  ;;  %973 = vmatprep.mubr.bf16.mxu1 %v629_v11  ;;  %v381_v10 = vld [vmem:[%s2342_s17 + $0x100] sm:$0xff]  ;;  %v384_v11 = vld [vmem:[%s2342_s17 + $0x118] sm:$0xff]  ;;  %v571_v16 = vpack.c.bf16 %v412_v9, %v409_v4  ;;  %v446_v4 = vld [vmem:[%s2342_s17 + $0x308] sm:$0xff] }
  0xc7   : > { %v558_v17 = vpack.c.bf16 %v384_v11, %v381_v10  ;;  %v449_v9 = vld [vmem:[%s2342_s17 + $0x320] sm:$0xff]  ;;  %v447_v10 = vld [vmem:[%s2342_s17 + $0x310] sm:$0xff]  ;;  %v450_v11 = vld [vmem:[%s2342_s17 + $0x328] sm:$0xff] }
  0xc8   : > { %v590_v14 = vpack.c.bf16 %v449_v9, %v446_v4  ;;  %v591_v15 = vpack.c.bf16 %v450_v11, %v447_v10 }
  0xcd   : > { %782 = vmatmul.mubr.bf16.gmra.mxu0 %v556_v20  ;;  %974 = vmatmul.mubr.bf16.gmra.mxu1 %v628_v21  ;;  %v415_v20 = vld [vmem:[%s2342_s17 + $0x210] sm:$0xff]  ;;  %v418_v21 = vld [vmem:[%s2342_s17 + $0x228] sm:$0xff] }
  0xce   : > { %789 = vmatprep.mubr.bf16.mxu0 %v560_v22  ;;  %981 = vmatprep.mubr.bf16.mxu1 %v632_v23  ;;  %v393_v22 = vld [vmem:[%s2342_s17 + $0x160] sm:$0xff]  ;;  %v396_v23 = vld [vmem:[%s2342_s17 + $0x178] sm:$0xff]  ;;  %v574_v28 = vpack.c.bf16 %v418_v21, %v415_v20  ;;  %v455_v21 = vld [vmem:[%s2342_s17 + $0x350] sm:$0xff] }
  0xcf   : > { %v564_v29 = vpack.c.bf16 %v396_v23, %v393_v22  ;;  %v452_v20 = vld [vmem:[%s2342_s17 + $0x338] sm:$0xff]  ;;  %v459_v22 = vld [vmem:[%s2342_s17 + $0x370] sm:$0xff]  ;;  %v462_v23 = vld [vmem:[%s2342_s17 + $0x388] sm:$0xff] }
  0xd0   : > { %v593_v26 = vpack.c.bf16 %v455_v21, %v452_v20  ;;  %v597_v27 = vpack.c.bf16 %v462_v23, %v459_v22 }
  0xd5   : > { %790 = vmatmul.mubr.bf16.gmra.mxu0 %v559_v32  ;;  %982 = vmatmul.mubr.bf16.gmra.mxu1 %v631_v33  ;;  %v421_v32 = vld [vmem:[%s2342_s17 + $0x240] sm:$0xff]  ;;  %v424_v33 = vld [vmem:[%s2342_s17 + $0x258] sm:$0xff] }
  0xd6   : > { %797 = vmatprep.mubr.bf16.mxu0 %v563_v34  ;;  %989 = vmatprep.mubr.bf16.mxu1 %v635_v35  ;;  %v405_v34 = vld [vmem:[%s2342_s17 + $0x1c0] sm:$0xff]  ;;  %v408_v35 = vld [vmem:[%s2342_s17 + $0x1d8] sm:$0xff]  ;;  %v577_v40 = vpack.c.bf16 %v424_v33, %v421_v32  ;;  %v458_v32 = vld [vmem:[%s2342_s17 + $0x368] sm:$0xff] }
  0xd7   : > { %v570_v41 = vpack.c.bf16 %v408_v35, %v405_v34  ;;  %v461_v33 = vld [vmem:[%s2342_s17 + $0x380] sm:$0xff]  ;;  %v471_v34 = vld [vmem:[%s2342_s17 + $0x3d0] sm:$0xff]  ;;  %v474_v35 = vld [vmem:[%s2342_s17 + $0x3e8] sm:$0xff] }
  0xd8   : > { %v596_v38 = vpack.c.bf16 %v461_v33, %v458_v32  ;;  %v603_v39 = vpack.c.bf16 %v474_v35, %v471_v34 }
  0xdd   : > { %798 = vmatmul.mubr.bf16.gmra.mxu0 %v562_v44  ;;  %990 = vmatmul.mubr.bf16.gmra.mxu1 %v634_v45  ;;  %v427_v44 = vld [vmem:[%s2342_s17 + $0x270] sm:$0xff]  ;;  %v430_v45 = vld [vmem:[%s2342_s17 + $0x288] sm:$0xff] }
  0xde   : > { %805 = vmatprep.mubr.bf16.mxu0 %v566_v46  ;;  %1908 = vmatprep.mubr.bf16.mxu1 %v543_v47  ;;  %v417_v46 = vld [vmem:[%s2342_s17 + $0x220] sm:$0xff]  ;;  %v420_v47 = vld [vmem:[%s2342_s17 + $0x238] sm:$0xff]  ;;  %v580_v52 = vpack.c.bf16 %v430_v45, %v427_v44  ;;  %v467_v45 = vld [vmem:[%s2342_s17 + $0x3b0] sm:$0xff] }
  0xdf   : > { %v576_v53 = vpack.c.bf16 %v420_v47, %v417_v46  ;;  %v464_v44 = vld [vmem:[%s2342_s17 + $0x398] sm:$0xff]  ;;  %v483_v46 = vld [vmem:[%s2342_s17 + $0x430] sm:$0xff]  ;;  %v486_v47 = vld [vmem:[%s2342_s17 + $0x448] sm:$0xff] }
  0xe0   : > { %v599_v50 = vpack.c.bf16 %v467_v45, %v464_v44  ;;  %v609_v51 = vpack.c.bf16 %v486_v47, %v483_v46 }
  0xe5   : > { %806 = vmatmul.mubr.bf16.gmra.mxu0 %v565_v56  ;;  %1909 = vmatmul.mubr.bf16.vlgmr.msra.gmra.mxu1 %v546_v57  ;;  %v433_v56 = vld [vmem:[%s2342_s17 + $0x2a0] sm:$0xff]  ;;  %v436_v57 = vld [vmem:[%s2342_s17 + $0x2b8] sm:$0xff] }
  0xe6   : > { %813 = vmatprep.mubr.bf16.mxu0 %v569_v58  ;;  %1912 = vmatprep.mubr.bf16.mxu1 %v549_v59  ;;  %v429_v58 = vld [vmem:[%s2342_s17 + $0x280] sm:$0xff]  ;;  %v432_v59 = vld [vmem:[%s2342_s17 + $0x298] sm:$0xff]  ;;  %v583_v0 = vpack.c.bf16 %v436_v57, %v433_v56  ;;  %v470_v56 = vld [vmem:[%s2342_s17 + $0x3c8] sm:$0xff] }
  0xe7   : > { %v582_v1 = vpack.c.bf16 %v432_v59, %v429_v58  ;;  %v473_v57 = vld [vmem:[%s2342_s17 + $0x3e0] sm:$0xff]  ;;  %v495_v58 = vld [vmem:[%s2342_s17 + $0x490] sm:$0xff]  ;;  %v498_v59 = vld [vmem:[%s2342_s17 + $0x4a8] sm:$0xff] }
  0xe8   : > { %v602_v62 = vpack.c.bf16 %v473_v57, %v470_v56  ;;  %v615_v63 = vpack.c.bf16 %v498_v59, %v495_v58 }
  0xed   : > { %814 = vmatmul.mubr.bf16.gmra.mxu0 %v568_v5  ;;  %1913 = vmatmul.mubr.bf16.gmra.mxu1 %v552_v6  ;;  %v439_v5 = vld [vmem:[%s2342_s17 + $0x2d0] sm:$0xff]  ;;  %v442_v6 = vld [vmem:[%s2342_s17 + $0x2e8] sm:$0xff] }
  0xee   : > { %821 = vmatprep.mubr.bf16.mxu0 %v572_v7  ;;  %1916 = vmatprep.mubr.bf16.mxu1 %v555_v8  ;;  %v441_v7 = vld [vmem:[%s2342_s17 + $0x2e0] sm:$0xff]  ;;  %v444_v8 = vld [vmem:[%s2342_s17 + $0x2f8] sm:$0xff]  ;;  %v586_v12 = vpack.c.bf16 %v442_v6, %v439_v5  ;;  %v479_v6 = vld [vmem:[%s2342_s17 + $0x410] sm:$0xff] }
  0xef   : > { %v588_v13 = vpack.c.bf16 %v444_v8, %v441_v7  ;;  %v476_v5 = vld [vmem:[%s2342_s17 + $0x3f8] sm:$0xff]  ;;  %v507_v7 = vld [vmem:[%s2342_s17 + $0x4f0] sm:$0xff]  ;;  %v510_v8 = vld [vmem:[%s2342_s17 + $0x508] sm:$0xff] }
  0xf0   : > { %v605_v10 = vpack.c.bf16 %v479_v6, %v476_v5  ;;  %v621_v11 = vpack.c.bf16 %v510_v8, %v507_v7 }
  0xf5   : > { %822 = vmatmul.mubr.bf16.gmra.mxu0 %v571_v16  ;;  %1917 = vmatmul.mubr.bf16.gmra.mxu1 %v558_v17  ;;  %v445_v16 = vld [vmem:[%s2342_s17 + $0x300] sm:$0xff]  ;;  %v448_v17 = vld [vmem:[%s2342_s17 + $0x318] sm:$0xff] }
  0xf6   : > { %829 = vmatprep.mubr.bf16.mxu0 %v575_v18  ;;  %1920 = vmatprep.mubr.bf16.mxu1 %v561_v19  ;;  %v453_v18 = vld [vmem:[%s2342_s17 + $0x340] sm:$0xff]  ;;  %v456_v19 = vld [vmem:[%s2342_s17 + $0x358] sm:$0xff]  ;;  %v589_v24 = vpack.c.bf16 %v448_v17, %v445_v16  ;;  %v482_v16 = vld [vmem:[%s2342_s17 + $0x428] sm:$0xff] }
  0xf7   : > { %v594_v25 = vpack.c.bf16 %v456_v19, %v453_v18  ;;  %v485_v17 = vld [vmem:[%s2342_s17 + $0x440] sm:$0xff]  ;;  %v519_v18 = vld [vmem:[%s2342_s17 + $0x550] sm:$0xff]  ;;  %v522_v19 = vld [vmem:[%s2342_s17 + $0x568] sm:$0xff] }
  0xf8   : > { %v608_v22 = vpack.c.bf16 %v485_v17, %v482_v16  ;;  %v627_v23 = vpack.c.bf16 %v522_v19, %v519_v18 }
  0xfd   : > { %830 = vmatmul.mubr.bf16.gmra.mxu0 %v574_v28  ;;  %1921 = vmatmul.mubr.bf16.gmra.mxu1 %v564_v29  ;;  %v451_v28 = vld [vmem:[%s2342_s17 + $0x330] sm:$0xff]  ;;  %v454_v29 = vld [vmem:[%s2342_s17 + $0x348] sm:$0xff] }
  0xfe   : > { %837 = vmatprep.mubr.bf16.mxu0 %v578_v30  ;;  %1924 = vmatprep.mubr.bf16.mxu1 %v567_v31  ;;  %v465_v30 = vld [vmem:[%s2342_s17 + $0x3a0] sm:$0xff]  ;;  %v468_v31 = vld [vmem:[%s2342_s17 + $0x3b8] sm:$0xff]  ;;  %v592_v36 = vpack.c.bf16 %v454_v29, %v451_v28  ;;  %v491_v29 = vld [vmem:[%s2342_s17 + $0x470] sm:$0xff] }
  0xff   : > { %v600_v37 = vpack.c.bf16 %v468_v31, %v465_v30  ;;  %v488_v28 = vld [vmem:[%s2342_s17 + $0x458] sm:$0xff]  ;;  %v531_v30 = vld [vmem:[%s2342_s17 + $0x5b0] sm:$0xff]  ;;  %v534_v31 = vld [vmem:[%s2342_s17 + $0x5c8] sm:$0xff] }
 0x100   : > { %v611_v34 = vpack.c.bf16 %v491_v29, %v488_v28  ;;  %v633_v35 = vpack.c.bf16 %v534_v31, %v531_v30 }
 0x105   : > { %838 = vmatmul.mubr.bf16.gmra.mxu0 %v577_v40  ;;  %1925 = vmatmul.mubr.bf16.gmra.mxu1 %v570_v41  ;;  %v457_v40 = vld [vmem:[%s2342_s17 + $0x360] sm:$0xff]  ;;  %v460_v41 = vld [vmem:[%s2342_s17 + $0x378] sm:$0xff] }
 0x106   : > { %845 = vmatprep.mubr.bf16.mxu0 %v581_v42  ;;  %1928 = vmatprep.mubr.bf16.mxu1 %v573_v43  ;;  %v477_v42 = vld [vmem:[%s2342_s17 + $0x400] sm:$0xff]  ;;  %v480_v43 = vld [vmem:[%s2342_s17 + $0x418] sm:$0xff]  ;;  %v595_v48 = vpack.c.bf16 %v460_v41, %v457_v40 }
 0x107   : > { %v606_v49 = vpack.c.bf16 %v480_v43, %v477_v42 }
 0x10d   : > { %846 = vmatmul.mubr.bf16.gmra.mxu0 %v580_v52  ;;  %1929 = vmatmul.mubr.bf16.gmra.mxu1 %v576_v53  ;;  %v463_v52 = vld [vmem:[%s2342_s17 + $0x390] sm:$0xff]  ;;  %v466_v53 = vld [vmem:[%s2342_s17 + $0x3a8] sm:$0xff] }
 0x10e   : > { %853 = vmatprep.mubr.bf16.mxu0 %v584_v54  ;;  %1932 = vmatprep.mubr.bf16.mxu1 %v579_v55  ;;  %v489_v54 = vld [vmem:[%s2342_s17 + $0x460] sm:$0xff]  ;;  %v492_v55 = vld [vmem:[%s2342_s17 + $0x478] sm:$0xff]  ;;  %v598_v60 = vpack.c.bf16 %v466_v53, %v463_v52 }
 0x10f   : > { %v612_v61 = vpack.c.bf16 %v492_v55, %v489_v54 }
 0x115   : > { %854 = vmatmul.mubr.bf16.gmra.mxu0 %v583_v0  ;;  %1933 = vmatmul.mubr.bf16.gmra.mxu1 %v582_v1  ;;  %v469_v0 = vld [vmem:[%s2342_s17 + $0x3c0] sm:$0xff]  ;;  %v472_v1 = vld [vmem:[%s2342_s17 + $0x3d8] sm:$0xff] }
 0x116   : > { %861 = vmatprep.mubr.bf16.mxu0 %v587_v2  ;;  %1936 = vmatprep.mubr.bf16.mxu1 %v585_v3  ;;  %v501_v2 = vld [vmem:[%s2342_s17 + $0x4c0] sm:$0xff]  ;;  %v504_v3 = vld [vmem:[%s2342_s17 + $0x4d8] sm:$0xff]  ;;  %v601_v4 = vpack.c.bf16 %v472_v1, %v469_v0 }
 0x117   : > { %v618_v9 = vpack.c.bf16 %v504_v3, %v501_v2 }
 0x11d   : > { %862 = vmatmul.mubr.bf16.gmra.mxu0 %v586_v12  ;;  %1937 = vmatmul.mubr.bf16.gmra.mxu1 %v588_v13  ;;  %v475_v12 = vld [vmem:[%s2342_s17 + $0x3f0] sm:$0xff]  ;;  %v478_v13 = vld [vmem:[%s2342_s17 + $0x408] sm:$0xff] }
 0x11e   : > { %869 = vmatprep.mubr.bf16.mxu0 %v590_v14  ;;  %1940 = vmatprep.mubr.bf16.mxu1 %v591_v15  ;;  %v513_v14 = vld [vmem:[%s2342_s17 + $0x520] sm:$0xff]  ;;  %v516_v15 = vld [vmem:[%s2342_s17 + $0x538] sm:$0xff]  ;;  %v604_v20 = vpack.c.bf16 %v478_v13, %v475_v12 }
 0x11f   : > { %v624_v21 = vpack.c.bf16 %v516_v15, %v513_v14 }
 0x125   : > { %870 = vmatmul.mubr.bf16.gmra.mxu0 %v589_v24  ;;  %1941 = vmatmul.mubr.bf16.gmra.mxu1 %v594_v25  ;;  %v481_v24 = vld [vmem:[%s2342_s17 + $0x420] sm:$0xff]  ;;  %v484_v25 = vld [vmem:[%s2342_s17 + $0x438] sm:$0xff] }
 0x126   : > { %877 = vmatprep.mubr.bf16.mxu0 %v593_v26  ;;  %1944 = vmatprep.mubr.bf16.mxu1 %v597_v27  ;;  %v525_v26 = vld [vmem:[%s2342_s17 + $0x580] sm:$0xff]  ;;  %v528_v27 = vld [vmem:[%s2342_s17 + $0x598] sm:$0xff]  ;;  %v607_v32 = vpack.c.bf16 %v484_v25, %v481_v24 }
 0x127   : > { %v630_v33 = vpack.c.bf16 %v528_v27, %v525_v26 }
 0x12d   : > { %878 = vmatmul.mubr.bf16.gmra.mxu0 %v592_v36  ;;  %1945 = vmatmul.mubr.bf16.gmra.mxu1 %v600_v37  ;;  %v487_v36 = vld [vmem:[%s2342_s17 + $0x450] sm:$0xff]  ;;  %v490_v37 = vld [vmem:[%s2342_s17 + $0x468] sm:$0xff] }
 0x12e   : > { %885 = vmatprep.mubr.bf16.mxu0 %v596_v38  ;;  %1948 = vmatprep.mubr.bf16.mxu1 %v603_v39  ;;  %v537_v38 = vld [vmem:[%s2342_s17 + $0x5e0] sm:$0xff]  ;;  %v540_v39 = vld [vmem:[%s2342_s17 + $0x5f8] sm:$0xff]  ;;  %v610_v40 = vpack.c.bf16 %v490_v37, %v487_v36 }
 0x12f   : > { %v636_v41 = vpack.c.bf16 %v540_v39, %v537_v38 }
 0x135   : > { %886 = vmatmul.mubr.bf16.gmra.mxu0 %v595_v48  ;;  %1949 = vmatmul.mubr.bf16.gmra.mxu1 %v606_v49 }
 0x136   : > { %893 = vmatprep.mubr.bf16.mxu0 %v599_v50  ;;  %1952 = vmatprep.mubr.bf16.mxu1 %v609_v51 }
 0x13d   : > { %894 = vmatmul.mubr.bf16.gmra.mxu0 %v598_v60  ;;  %1953 = vmatmul.mubr.bf16.gmra.mxu1 %v612_v61 }
 0x13e   : > { %901 = vmatprep.mubr.bf16.mxu0 %v602_v62  ;;  %1956 = vmatprep.mubr.bf16.mxu1 %v615_v63 }
 0x145   : > { %902 = vmatmul.mubr.bf16.gmra.mxu0 %v601_v4  ;;  %1957 = vmatmul.mubr.bf16.gmra.mxu1 %v618_v9 }
 0x146   : > { %909 = vmatprep.mubr.bf16.mxu0 %v605_v10  ;;  %1960 = vmatprep.mubr.bf16.mxu1 %v621_v11 }
 0x14d   : > { %910 = vmatmul.mubr.bf16.gmra.mxu0 %v604_v20  ;;  %1961 = vmatmul.mubr.bf16.gmra.mxu1 %v624_v21 }
 0x14e   : > { %917 = vmatprep.mubr.bf16.mxu0 %v608_v22  ;;  %1964 = vmatprep.mubr.bf16.mxu1 %v627_v23 }
 0x155   : > { %918 = vmatmul.mubr.bf16.gmra.mxu0 %v607_v32  ;;  %1965 = vmatmul.mubr.bf16.gmra.mxu1 %v630_v33 }
 0x156   : > { %925 = vmatprep.mubr.bf16.mxu0 %v611_v34  ;;  %1968 = vmatprep.mubr.bf16.mxu1 %v633_v35 }
 0x15d   : > { %926 = vmatmul.mubr.bf16.gmra.mxu0 %v610_v40  ;;  %1969 = vmatmul.mubr.bf16.gmra.mxu1 %v636_v41 }
 0x165   : > { %v2691_v42 = vpop.f32.mrf.mxu0  ;;  %v2693_v43 = vpop.f32.mrf.mxu1 }
 0x167   : > { %v745_v44 = vpop.f32.mrf.mxu0  ;;  %v937_v45 = vpop.f32.mrf.mxu1 }
 0x168   : > { %v287_v45 = vld [vmem:[#allocation2 + $0xd8] sm:$0xff] }
 0x169   : > { %v2695_v46 = vpop.f32.mrf.mxu0  ;;  %v2697_v47 = vpop.f32.mrf.mxu1 }
 0x16b   : > { %v748_v48 = vpop.f32.mrf.mxu0  ;;  %v940_v49 = vpop.f32.mrf.mxu1 }
 0x16d   : > { %v751_v50 = vpop.f32.mrf.mxu0  ;;  %v2699_v51 = vpop.f32.mrf.mxu1 }
 0x16f   : > { %v753_v52 = vpop.f32.mrf.mxu0  ;;  %v945_v53 = vpop.f32.mrf.mxu1 }
 0x170   : > { %v285_v53 = vld [vmem:[#allocation2 + $0xb0] sm:$0xff] }
 0x171   : > { %v2701_v54 = vpop.f32.mrf.mxu0  ;;  %v2703_v55 = vpop.f32.mrf.mxu1 }
 0x173   : > { %v756_v56 = vpop.f32.mrf.mxu0  ;;  %v948_v57 = vpop.f32.mrf.mxu1 }
 0x175   : > { %v2705_v58 = vpop.f32.mrf.mxu0  ;;  %v2707_v59 = vpop.f32.mrf.mxu1 }
 0x177   : > { %v761_v60 = vpop.f32.mrf.mxu0  ;;  %v953_v61 = vpop.f32.mrf.mxu1 }
 0x179   : > { %v2709_v62 = vpop.f32.mrf.mxu0  ;;  %v2711_v63 = vpop.f32.mrf.mxu1 }
 0x17b   : > { %v764_v0 = vpop.f32.mrf.mxu0  ;;  %v956_v1 = vpop.f32.mrf.mxu1 }
 0x17c   : > { %v288_v0 = vld [vmem:[#allocation2 + $0x18] sm:$0xff] }
 0x17d   : > { %v2713_v2 = vpop.f32.mrf.mxu0  ;;  %v2715_v3 = vpop.f32.mrf.mxu1 }
 0x17f   : > { %v769_v5 = vpop.f32.mrf.mxu0  ;;  %v961_v6 = vpop.f32.mrf.mxu1 }
 0x181   : > { %v2717_v7 = vpop.f32.mrf.mxu0  ;;  %v2719_v8 = vpop.f32.mrf.mxu1 }
 0x183   : > { %v772_v4 = vpop.f32.mrf.mxu0  ;;  %v964_v9 = vpop.f32.mrf.mxu1 }
 0x184   : > { %v286_v9 = vld [vmem:[#allocation2 + $0x1b0] sm:$0xff] }
 0x185   : > { %v2721_v10 = vpop.f32.mrf.mxu0  ;;  %v2723_v11 = vpop.f32.mrf.mxu1 }
 0x187   : > { %v777_v12 = vpop.f32.mrf.mxu0  ;;  %v969_v13 = vpop.f32.mrf.mxu1 }
 0x189   : > { %v2725_v14 = vpop.f32.mrf.mxu0  ;;  %v2727_v15 = vpop.f32.mrf.mxu1 }
 0x18b   : > { %v780_v16 = vpop.f32.mrf.mxu0  ;;  %v972_v17 = vpop.f32.mrf.mxu1 }
 0x18c   : > { %v291_v17 = vld [vmem:[#allocation2 + $0x130] sm:$0xff] }
 0x18d   : > { %v2729_v18 = vpop.f32.mrf.mxu0  ;;  %v2731_v19 = vpop.f32.mrf.mxu1 }
 0x18f   : > { %v785_v20 = vpop.f32.mrf.mxu0  ;;  %v977_v21 = vpop.f32.mrf.mxu1 }
 0x191   : > { %v2733_v22 = vpop.f32.mrf.mxu0  ;;  %v2735_v23 = vpop.f32.mrf.mxu1 }
 0x193   : > { %v788_v24 = vpop.f32.mrf.mxu0  ;;  %v980_v25 = vpop.f32.mrf.mxu1 }
 0x194   : > { %v289_v25 = vld [vmem:[#allocation2 + $0x50] sm:$0xff] }
 0x195   : > { %v2737_v26 = vpop.f32.mrf.mxu0  ;;  %v2739_v27 = vpop.f32.mrf.mxu1 }
 0x197   : > { %v793_v28 = vpop.f32.mrf.mxu0  ;;  %v985_v29 = vpop.f32.mrf.mxu1 }
 0x199   : > { %v2741_v30 = vpop.f32.mrf.mxu0  ;;  %v2743_v31 = vpop.f32.mrf.mxu1 }
 0x19b   : > { %v796_v32 = vpop.f32.mrf.mxu0  ;;  %v988_v33 = vpop.f32.mrf.mxu1 }
 0x19c   : > { %v292_v33 = vld [vmem:[#allocation2 + $0x48] sm:$0xff] }
 0x19d   : > { %v2745_v34 = vpop.f32.mrf.mxu0  ;;  %v2747_v35 = vpop.f32.mrf.mxu1 }
 0x19f   : > { %v801_v36 = vpop.f32.mrf.mxu0  ;;  %v993_v37 = vpop.f32.mrf.mxu1 }
 0x1a1   : > { %v2749_v38 = vpop.f32.mrf.mxu0  ;;  %v2751_v39 = vpop.f32.mrf.mxu1 }
 0x1a3   : > { %v804_v40 = vpop.f32.mrf.mxu0  ;;  %v996_v41 = vpop.f32.mrf.mxu1 }
 0x1a4   : > { %v290_v41 = vld [vmem:[#allocation2 + $0x168] sm:$0xff] }
 0x1a5   : > { %v2753_v44 = vpop.f32.mrf.mxu0  ;;  %v1910_v48 = vpop.f32.mrf.mxu1 }
 0x1a6   : > { %v1041_v49 = vadd.f32 %v1910_v48, %v751_v50 }
 0x1a7   : > { %v809_v52 = vpop.f32.mrf.mxu0  ;;  %v1032_v56 = vpop.f32.mrf.mxu1 }
 0x1a8   : > { %v1289_v57 = vadd.f32 %v1041_v49, %v287_v45  ;;  %v1033_v60 = vadd.f32 %v1032_v56, %v2691_v42  ;;  %v295_v52 = vld [vmem:[#allocation2 + $0x118] sm:$0xff] }
 0x1a9   : > { %v2756_v61 = vpop.f32.mrf.mxu0  ;;  %v1911_v1 = vpop.f32.mrf.mxu1 }
 0x1aa   : > { %1353 = vst [vmem:[#allocation2 + $0xd8] sm:$0xff] %v1289_v57  ;;  %v1287_v5 = vadd.f32 %v1033_v60, %v285_v53  ;;  %v1044_v6 = vadd.f32 %v1911_v1, %v2701_v54  ;;  %v293_v60 = vld [vmem:[#allocation2 + $0x180] sm:$0xff] }
 0x1ab   : > { %v812_v4 = vpop.f32.mrf.mxu0  ;;  %v1035_v12 = vpop.f32.mrf.mxu1 }
 0x1ac   : > { %1351 = vst [vmem:[#allocation2 + $0xb0] sm:$0xff] %v1287_v5  ;;  %v1290_v13 = vadd.f32 %v1044_v6, %v288_v0  ;;  %v1036_v50 = vadd.f32 %v1035_v12, %v2695_v46  ;;  %v296_v6 = vld [vmem:[#allocation2 + $0x98] sm:$0xff] }
 0x1ad   : > { %v2760_v16 = vpop.f32.mrf.mxu0  ;;  %v1914_v20 = vpop.f32.mrf.mxu1 }
 0x1ae   : > { %1354 = vst [vmem:[#allocation2 + $0x18] sm:$0xff] %v1290_v13  ;;  %v1288_v42 = vadd.f32 %v1036_v50, %v286_v9  ;;  %v1057_v21 = vadd.f32 %v1914_v20, %v2713_v2  ;;  %v294_v13 = vld [vmem:[#allocation2 + $0x110] sm:$0xff] }
 0x1af   : > { %v817_v24 = vpop.f32.mrf.mxu0  ;;  %v1048_v28 = vpop.f32.mrf.mxu1 }
 0x1b0   : > { %1352 = vst [vmem:[#allocation2 + $0x1b0] sm:$0xff] %v1288_v42  ;;  %v1293_v54 = vadd.f32 %v1057_v21, %v291_v17  ;;  %v1049_v29 = vadd.f32 %v1048_v28, %v2705_v58  ;;  %v299_v42 = vld [vmem:[#allocation2 + $0x108] sm:$0xff]  ;;  %v297_v28 = vld [vmem:[#allocation2 + $0x120] sm:$0xff] }
 0x1b1   : > { %v2764_v32 = vpop.f32.mrf.mxu0  ;;  %v1915_v36 = vpop.f32.mrf.mxu1 }
 0x1b2   : > { %1357 = vst [vmem:[#allocation2 + $0x130] sm:$0xff] %v1293_v54  ;;  %v1291_v46 = vadd.f32 %v1049_v29, %v289_v25  ;;  %v1060_v37 = vadd.f32 %v1915_v36, %v2717_v7  ;;  %v300_v36 = vld [vmem:[#allocation2 + $0x60] sm:$0xff] }
 0x1b3   : > { %v820_v40 = vpop.f32.mrf.mxu0  ;;  %v1051_v45 = vpop.f32.mrf.mxu1 }
 0x1b4   : > { %1355 = vst [vmem:[#allocation2 + $0x50] sm:$0xff] %v1291_v46  ;;  %v1294_v2 = vadd.f32 %v1060_v37, %v292_v33  ;;  %v1052_v48 = vadd.f32 %v1051_v45, %v2709_v62 }
 0x1b5   : > { %v2768_v49 = vpop.f32.mrf.mxu0  ;;  %v1918_v53 = vpop.f32.mrf.mxu1 }
 0x1b6   : > { %1358 = vst [vmem:[#allocation2 + $0x48] sm:$0xff] %v1294_v2  ;;  %v1292_v58 = vadd.f32 %v1052_v48, %v290_v41  ;;  %v1073_v56 = vadd.f32 %v1918_v53, %v2729_v18  ;;  %v298_v41 = vld [vmem:[#allocation2 + $0x150] sm:$0xff] }
 0x1b7   : > { %v825_v57 = vpop.f32.mrf.mxu0  ;;  %v1064_v0 = vpop.f32.mrf.mxu1 }
 0x1b8   : > { %1356 = vst [vmem:[#allocation2 + $0x168] sm:$0xff] %v1292_v58  ;;  %v1297_v7 = vadd.f32 %v1073_v56, %v295_v52  ;;  %v1065_v1 = vadd.f32 %v1064_v0, %v2721_v10  ;;  %v303_v52 = vld [vmem:[#allocation2 + $0x138] sm:$0xff]  ;;  %v301_v57 = vld [vmem:[#allocation2 + $0xe0] sm:$0xff] }
 0x1b9   : > { %v2772_v5 = vpop.f32.mrf.mxu0  ;;  %v1919_v4 = vpop.f32.mrf.mxu1 }
 0x1ba   : > { %1361 = vst [vmem:[#allocation2 + $0x118] sm:$0xff] %v1297_v7  ;;  %v1295_v62 = vadd.f32 %v1065_v1, %v293_v60  ;;  %v1076_v9 = vadd.f32 %v1919_v4, %v2733_v22  ;;  %v304_v1 = vld [vmem:[#allocation2 + $0x140] sm:$0xff] }
 0x1bb   : > { %v828_v12 = vpop.f32.mrf.mxu0  ;;  %v1067_v50 = vpop.f32.mrf.mxu1 }
 0x1bc   : > { %1359 = vst [vmem:[#allocation2 + $0x180] sm:$0xff] %v1295_v62  ;;  %v1298_v18 = vadd.f32 %v1076_v9, %v296_v6  ;;  %v1068_v17 = vadd.f32 %v1067_v50, %v2725_v14  ;;  %v302_v9 = vld [vmem:[#allocation2 + $0x188] sm:$0xff] }
 0x1bd   : > { %v831_v20 = vpop.f32.mrf.mxu0  ;;  %v1922_v21 = vpop.f32.mrf.mxu1 }
 0x1be   : > { %1362 = vst [vmem:[#allocation2 + $0x98] sm:$0xff] %v1298_v18  ;;  %v1296_v10 = vadd.f32 %v1068_v17, %v294_v13  ;;  %v1089_v24 = vadd.f32 %v1922_v21, %v2745_v34  ;;  %v307_v18 = vld [vmem:[#allocation2 + $0x1b8] sm:$0xff] }
 0x1bf   : > { %v833_v25 = vpop.f32.mrf.mxu0  ;;  %v1080_v54 = vpop.f32.mrf.mxu1 }
 0x1c0   : > { %1360 = vst [vmem:[#allocation2 + $0x110] sm:$0xff] %v1296_v10  ;;  %v1301_v29 = vadd.f32 %v1089_v24, %v299_v42  ;;  %v1081_v22 = vadd.f32 %v1080_v54, %v2737_v26  ;;  %v305_v10 = vld [vmem:[#allocation2 + $0x80] sm:$0xff]  ;;  %v308_v54 = vld [vmem:[#allocation2 + $0x28] sm:$0xff] }
 0x1c1   : > { %v834_v33 = vpop.f32.mrf.mxu0  ;;  %v1923_v46 = vpop.f32.mrf.mxu1 }
 0x1c2   : > { %1365 = vst [vmem:[#allocation2 + $0x108] sm:$0xff] %v1301_v29  ;;  %v1299_v37 = vadd.f32 %v1081_v22, %v297_v28  ;;  %v1092_v14 = vadd.f32 %v1923_v46, %v2749_v38  ;;  %v306_v46 = vld [vmem:[#allocation2 + $0x1a8] sm:$0xff] }
 0x1c3   : > { %v836_v40 = vpop.f32.mrf.mxu0  ;;  %v1083_v45 = vpop.f32.mrf.mxu1 }
 0x1c4   : > { %1363 = vst [vmem:[#allocation2 + $0x120] sm:$0xff] %v1299_v37  ;;  %v1302_v2 = vadd.f32 %v1092_v14, %v300_v36  ;;  %v1084_v34 = vadd.f32 %v1083_v45, %v2741_v30 }
 0x1c5   : > { %v839_v48 = vpop.f32.mrf.mxu0  ;;  %v1926_v53 = vpop.f32.mrf.mxu1 }
 0x1c6   : > { %1366 = vst [vmem:[#allocation2 + $0x60] sm:$0xff] %v1302_v2  ;;  %v1300_v58 = vadd.f32 %v1084_v34, %v298_v41  ;;  %v1105_v26 = vadd.f32 %v1926_v53, %v2760_v16  ;;  %v311_v41 = vld [vmem:[#allocation2 + $0x160] sm:$0xff] }
 0x1c7   : > { %v841_v56 = vpop.f32.mrf.mxu0  ;;  %v1096_v60 = vpop.f32.mrf.mxu1 }
 0x1c8   : > { %1364 = vst [vmem:[#allocation2 + $0x150] sm:$0xff] %v1300_v58  ;;  %v1305_v0 = vadd.f32 %v1105_v26, %v303_v52  ;;  %v1097_v38 = vadd.f32 %v1096_v60, %v2753_v44  ;;  %v309_v52 = vld [vmem:[#allocation2 + $0x1e8] sm:$0xff]  ;;  %v312_v56 = vld [vmem:[#allocation2 + $0x30] sm:$0xff] }
 0x1c9   : > { %v842_v7 = vpop.f32.mrf.mxu0  ;;  %v1927_v6 = vpop.f32.mrf.mxu1 }
 0x1ca   : > { %1369 = vst [vmem:[#allocation2 + $0x138] sm:$0xff] %v1305_v0  ;;  %v1303_v4 = vadd.f32 %v1097_v38, %v301_v57  ;;  %v1108_v30 = vadd.f32 %v1927_v6, %v2764_v32 }
 0x1cb   : > { %v844_v62 = vpop.f32.mrf.mxu0  ;;  %v1099_v12 = vpop.f32.mrf.mxu1 }
 0x1cc   : > { %1367 = vst [vmem:[#allocation2 + $0xe0] sm:$0xff] %v1303_v4  ;;  %v1306_v13 = vadd.f32 %v1108_v30, %v304_v1  ;;  %v1100_v16 = vadd.f32 %v1099_v12, %v2756_v61  ;;  %v315_v62 = vld [vmem:[#allocation2 + $0xf0] sm:$0xff] }
 0x1cd   : > { %v847_v50 = vpop.f32.mrf.mxu0  ;;  %v1930_v17 = vpop.f32.mrf.mxu1 }
 0x1ce   : > { %1370 = vst [vmem:[#allocation2 + $0x140] sm:$0xff] %v1306_v13  ;;  %v1304_v42 = vadd.f32 %v1100_v16, %v302_v9  ;;  %v1121_v44 = vadd.f32 %v1930_v17, %v831_v20 }
 0x1cf   : > { %v849_v21 = vpop.f32.mrf.mxu0  ;;  %v1112_v24 = vpop.f32.mrf.mxu1 }
 0x1d0   : > { %1368 = vst [vmem:[#allocation2 + $0x188] sm:$0xff] %v1304_v42  ;;  %v1309_v25 = vadd.f32 %v1121_v44, %v307_v18  ;;  %v1113_v32 = vadd.f32 %v1112_v24, %v2768_v49  ;;  %v316_v44 = vld [vmem:[#allocation2 + $0x8] sm:$0xff] }
 0x1d1   : > { %v850_v28 = vpop.f32.mrf.mxu0  ;;  %v1931_v29 = vpop.f32.mrf.mxu1 }
 0x1d2   : > { %1373 = vst [vmem:[#allocation2 + $0x1b8] sm:$0xff] %v1309_v25  ;;  %v1307_v22 = vadd.f32 %v1113_v32, %v305_v10  ;;  %v1124_v36 = vadd.f32 %v1931_v29, %v834_v33 }
 0x1d3   : > { %v852_v61 = vpop.f32.mrf.mxu0  ;;  %v1115_v37 = vpop.f32.mrf.mxu1 }
 0x1d4   : > { %1371 = vst [vmem:[#allocation2 + $0x80] sm:$0xff] %v1307_v22  ;;  %v1310_v14 = vadd.f32 %v1124_v36, %v308_v54  ;;  %v1116_v20 = vadd.f32 %v1115_v37, %v2772_v5  ;;  %v310_v5 = vld [vmem:[#allocation2 + $0xf8] sm:$0xff] }
 0x1d5   : > { %v855_v40 = vpop.f32.mrf.mxu0  ;;  %v1934_v45 = vpop.f32.mrf.mxu1 }
 0x1d6   : > { %1374 = vst [vmem:[#allocation2 + $0x28] sm:$0xff] %v1310_v14  ;;  %v1308_v2 = vadd.f32 %v1116_v20, %v306_v46  ;;  %v1137_v34 = vadd.f32 %v1934_v45, %v847_v50  ;;  %v317_v46 = vld [vmem:[#allocation2 + $0x148] sm:$0xff] }
 0x1d7   : > { %v857_v49 = vpop.f32.mrf.mxu0  ;;  %v1128_v53 = vpop.f32.mrf.mxu1 }
 0x1d8   : > { %1372 = vst [vmem:[#allocation2 + $0x1a8] sm:$0xff] %v1308_v2  ;;  %v1313_v58 = vadd.f32 %v1137_v34, %v311_v41  ;;  %v1129_v26 = vadd.f32 %v1128_v53, %v839_v48  ;;  %v313_v48 = vld [vmem:[#allocation2 + $0x1e0] sm:$0xff]  ;;  %v318_v2 = vld [vmem:[#allocation2 + $0x1d0] sm:$0xff] }
 0x1d9   : > { %v858_v33 = vpop.f32.mrf.mxu0  ;;  %v1935_v57 = vpop.f32.mrf.mxu1 }
 0x1da   : > { %1377 = vst [vmem:[#allocation2 + $0x160] sm:$0xff] %v1313_v58  ;;  %v1311_v60 = vadd.f32 %v1129_v26, %v309_v52  ;;  %v1140_v0 = vadd.f32 %v1935_v57, %v850_v28  ;;  %v319_v52 = vld [vmem:[#allocation2 + $0x100] sm:$0xff] }
 0x1db   : > { %v860_v38 = vpop.f32.mrf.mxu0  ;;  %v1131_v1 = vpop.f32.mrf.mxu1 }
 0x1dc   : > { %1375 = vst [vmem:[#allocation2 + $0x1e8] sm:$0xff] %v1311_v60  ;;  %v1314_v6 = vadd.f32 %v1140_v0, %v312_v56  ;;  %v1132_v4 = vadd.f32 %v1131_v1, %v842_v7  ;;  %v314_v7 = vld [vmem:[#allocation2] sm:$0xff]  ;;  %v320_v0 = vld [vmem:[#allocation2 + $0xc8] sm:$0xff] }
 0x1dd   : > { %v863_v30 = vpop.f32.mrf.mxu0  ;;  %v1938_v9 = vpop.f32.mrf.mxu1 }
 0x1de   : > { %1378 = vst [vmem:[#allocation2 + $0x30] sm:$0xff] %v1314_v6  ;;  %v1312_v12 = vadd.f32 %v1132_v4, %v310_v5  ;;  %v1153_v13 = vadd.f32 %v1938_v9, %v863_v30 }
 0x1df   : > { %v865_v16 = vpop.f32.mrf.mxu0  ;;  %v1144_v50 = vpop.f32.mrf.mxu1 }
 0x1e0   : > { %1376 = vst [vmem:[#allocation2 + $0xf8] sm:$0xff] %v1312_v12  ;;  %v1317_v18 = vadd.f32 %v1153_v13, %v315_v62  ;;  %v1145_v17 = vadd.f32 %v1144_v50, %v855_v40  ;;  %v321_v62 = vld [vmem:[#allocation2 + $0x40] sm:$0xff] }
 0x1e1   : > { %v866_v42 = vpop.f32.mrf.mxu0  ;;  %v1939_v21 = vpop.f32.mrf.mxu1 }
 0x1e2   : > { %1381 = vst [vmem:[#allocation2 + $0xf0] sm:$0xff] %v1317_v18  ;;  %v1315_v10 = vadd.f32 %v1145_v17, %v313_v48  ;;  %v1156_v24 = vadd.f32 %v1939_v21, %v866_v42  ;;  %v322_v18 = vld [vmem:[#allocation2 + $0x1f8] sm:$0xff] }
 0x1e3   : > { %v868_v25 = vpop.f32.mrf.mxu0  ;;  %v1147_v32 = vpop.f32.mrf.mxu1 }
 0x1e4   : > { %1379 = vst [vmem:[#allocation2 + $0x1e0] sm:$0xff] %v1315_v10  ;;  %v1318_v28 = vadd.f32 %v1156_v24, %v316_v44  ;;  %v1148_v54 = vadd.f32 %v1147_v32, %v858_v33  ;;  %v323_v25 = vld [vmem:[#allocation2 + $0x20] sm:$0xff] }
 0x1e5   : > { %v871_v29 = vpop.f32.mrf.mxu0  ;;  %v1942_v22 = vpop.f32.mrf.mxu1 }
 0x1e6   : > { %1382 = vst [vmem:[#allocation2 + $0x8] sm:$0xff] %v1318_v28  ;;  %v1316_v36 = vadd.f32 %v1148_v54, %v314_v7 }
 0x1e7   : > { %v873_v61 = vpop.f32.mrf.mxu0  ;;  %v1160_v37 = vpop.f32.mrf.mxu1 }
 0x1e8   : > { %1380 = vst [vmem:[#allocation2] sm:$0xff] %v1316_v36  ;;  %v1161_v14 = vadd.f32 %v1160_v37, %v871_v29  ;;  %v324_v36 = vld [vmem:[#allocation2 + $0x128] sm:$0xff] }
 0x1e9   : > { %v874_v20 = vpop.f32.mrf.mxu0  ;;  %v1943_v40 = vpop.f32.mrf.mxu1 }
 0x1ea   : > { %v1319_v41 = vadd.f32 %v1161_v14, %v317_v46 }
 0x1eb   : > { %v876_v45 = vpop.f32.mrf.mxu0  ;;  %v1163_v34 = vpop.f32.mrf.mxu1 }
 0x1ec   : > { %1383 = vst [vmem:[#allocation2 + $0x148] sm:$0xff] %v1319_v41  ;;  %v1164_v49 = vadd.f32 %v1163_v34, %v874_v20  ;;  %v325_v41 = vld [vmem:[#allocation2 + $0x1a0] sm:$0xff] }
 0x1ed   : > { %v879_v53 = vpop.f32.mrf.mxu0  ;;  %v1946_v58 = vpop.f32.mrf.mxu1 }
 0x1ee   : > { %v1320_v26 = vadd.f32 %v1164_v49, %v318_v2  ;;  %v1169_v33 = vadd.f32 %v1942_v22, %v879_v53  ;;  %v335_v2 = vld [vmem:[#allocation2 + $0xa8] sm:$0xff] }
 0x1ef   : > { %v881_v56 = vpop.f32.mrf.mxu0  ;;  %v1176_v57 = vpop.f32.mrf.mxu1 }
 0x1f0   : > { %1384 = vst [vmem:[#allocation2 + $0x1d0] sm:$0xff] %v1320_v26  ;;  %v1321_v60 = vadd.f32 %v1169_v33, %v319_v52 }
 0x1f1   : > { %v882_v38 = vpop.f32.mrf.mxu0  ;;  %v1947_v5 = vpop.f32.mrf.mxu1 }
 0x1f2   : > { %1385 = vst [vmem:[#allocation2 + $0x100] sm:$0xff] %v1321_v60  ;;  %v1172_v1 = vadd.f32 %v1943_v40, %v882_v38  ;;  %v326_v60 = vld [vmem:[#allocation2 + $0x1f0] sm:$0xff]  ;;  %v336_v38 = vld [vmem:[#allocation2 + $0x1c8] sm:$0xff] }
 0x1f3   : > { %v884_v6 = vpop.f32.mrf.mxu0  ;;  %v1179_v4 = vpop.f32.mrf.mxu1 }
 0x1f4   : > { %v1322_v30 = vadd.f32 %v1172_v1, %v320_v0 }
 0x1f5   : > { %v887_v9 = vpop.f32.mrf.mxu0  ;;  %v2786_v12 = vpop.f32.mrf.mxu1 }
 0x1f6   : > { %1386 = vst [vmem:[#allocation2 + $0xc8] sm:$0xff] %v1322_v30  ;;  %v1177_v13 = vadd.f32 %v1176_v57, %v887_v9 }
 0x1f7   : > { %v889_v16 = vpop.f32.mrf.mxu0  ;;  %v1192_v48 = vpop.f32.mrf.mxu1 }
 0x1f8   : > { %v1323_v50 = vadd.f32 %v1177_v13, %v321_v62  ;;  %v334_v62 = vld [vmem:[#allocation2 + $0x88] sm:$0xff] }
 0x1f9   : > { %v890_v17 = vpop.f32.mrf.mxu0  ;;  %v2788_v42 = vpop.f32.mrf.mxu1 }
 0x1fa   : > { %1387 = vst [vmem:[#allocation2 + $0x40] sm:$0xff] %v1323_v50  ;;  %v1180_v44 = vadd.f32 %v1179_v4, %v890_v17  ;;  %v339_v50 = vld [vmem:[#allocation2 + $0x68] sm:$0xff] }
 0x1fb   : > { %v892_v21 = vpop.f32.mrf.mxu0  ;;  %v1195_v10 = vpop.f32.mrf.mxu1 }
 0x1fc   : > { %v1324_v24 = vadd.f32 %v1180_v44, %v322_v18 }
 0x1fd   : > { %v895_v7 = vpop.f32.mrf.mxu0  ;;  %v2790_v32 = vpop.f32.mrf.mxu1 }
 0x1fe   : > { %1388 = vst [vmem:[#allocation2 + $0x1f8] sm:$0xff] %v1324_v24  ;;  %v1185_v28 = vadd.f32 %v1946_v58, %v895_v7  ;;  %v333_v58 = vld [vmem:[#allocation2 + $0xb8] sm:$0xff] }
 0x1ff   : > { %v897_v54 = vpop.f32.mrf.mxu0  ;;  %v2792_v29 = vpop.f32.mrf.mxu1 }
 0x200   : > { %v1325_v22 = vadd.f32 %v1185_v28, %v323_v25 }
 0x201   : > { %v898_v61 = vpop.f32.mrf.mxu0  ;;  %v2794_v46 = vpop.f32.mrf.mxu1 }
 0x202   : > { %1389 = vst [vmem:[#allocation2 + $0x20] sm:$0xff] %v1325_v22  ;;  %v1188_v37 = vadd.f32 %v1947_v5, %v898_v61  ;;  %v340_v22 = vld [vmem:[#allocation2 + $0x190] sm:$0xff] }
 0x203   : > { %v900_v14 = vpop.f32.mrf.mxu0  ;;  %v2796_v20 = vpop.f32.mrf.mxu1 }
 0x204   : > { %v1326_v40 = vadd.f32 %v1188_v37, %v324_v36  ;;  %v338_v14 = vld [vmem:[#allocation2 + $0x178] sm:$0xff] }
 0x205   : > { %v903_v45 = vpop.f32.mrf.mxu0  ;;  %v1958_v34 = vpop.f32.mrf.mxu1 }
 0x206   : > { %1390 = vst [vmem:[#allocation2 + $0x128] sm:$0xff] %v1326_v40  ;;  %v1193_v49 = vadd.f32 %v1192_v48, %v903_v45  ;;  %v1233_v52 = vadd.f32 %v1958_v34, %v2699_v51  ;;  %v327_v48 = vld [vmem:[#allocation2 + $0xe8] sm:$0xff] }
 0x207   : > { %v905_v53 = vpop.f32.mrf.mxu0  ;;  %v1224_v26 = vpop.f32.mrf.mxu1 }
 0x208   : > { %v1327_v33 = vadd.f32 %v1193_v49, %v325_v41  ;;  %v1337_v56 = vadd.f32 %v1233_v52, %v335_v2  ;;  %v1225_v57 = vadd.f32 %v1224_v26, %v2693_v43  ;;  %v343_v49 = vld [vmem:[#allocation2 + $0xc0] sm:$0xff]  ;;  %v341_v26 = vld [vmem:[#allocation2 + $0x198] sm:$0xff] }
 0x209   : > { %v906_v0 = vpop.f32.mrf.mxu0  ;;  %v1959_v5 = vpop.f32.mrf.mxu1 }
 0x20a   : > { %1391 = vst [vmem:[#allocation2 + $0x1a0] sm:$0xff] %v1327_v33  ;;  %1401 = vst [vmem:[#allocation2 + $0xa8] sm:$0xff] %v1337_v56  ;;  %v1335_v1 = vadd.f32 %v1225_v57, %v333_v58  ;;  %v1196_v6 = vadd.f32 %v1195_v10, %v906_v0  ;;  %v1236_v4 = vadd.f32 %v1959_v5, %v2703_v55  ;;  %v337_v10 = vld [vmem:[#allocation2 + $0x170] sm:$0xff] }
 0x20b   : > { %v908_v30 = vpop.f32.mrf.mxu0  ;;  %v1227_v51 = vpop.f32.mrf.mxu1 }
 0x20c   : > { %1399 = vst [vmem:[#allocation2 + $0xb8] sm:$0xff] %v1335_v1  ;;  %v1328_v9 = vadd.f32 %v1196_v6, %v326_v60  ;;  %v1338_v13 = vadd.f32 %v1236_v4, %v336_v38  ;;  %v1228_v16 = vadd.f32 %v1227_v51, %v2697_v47  ;;  %v328_v47 = vld [vmem:[#allocation2 + $0x78] sm:$0xff]  ;;  %v344_v38 = vld [vmem:[#allocation2 + $0x1c0] sm:$0xff] }
 0x20d   : > { %v911_v43 = vpop.f32.mrf.mxu0  ;;  %v1962_v18 = vpop.f32.mrf.mxu1  ;;  %v342_v4 = vld [vmem:[#allocation2 + $0x38] sm:$0xff] }
 0x20e   : > { %1392 = vst [vmem:[#allocation2 + $0x1f0] sm:$0xff] %v1328_v9  ;;  %1402 = vst [vmem:[#allocation2 + $0x1c8] sm:$0xff] %v1338_v13  ;;  %v1336_v17 = vadd.f32 %v1228_v16, %v334_v62  ;;  %v1201_v44 = vadd.f32 %v2786_v12, %v911_v43  ;;  %v1249_v21 = vadd.f32 %v1962_v18, %v2715_v3  ;;  %v347_v16 = vld [vmem:[#allocation2 + $0x58] sm:$0xff] }
 0x20f   : > { %v913_v55 = vpop.f32.mrf.mxu0  ;;  %v1240_v24 = vpop.f32.mrf.mxu1  ;;  %v345_v18 = vld [vmem:[#allocation2 + $0x158] sm:$0xff] }
 0x210   : > { %1400 = vst [vmem:[#allocation2 + $0x88] sm:$0xff] %v1336_v17  ;;  %v1329_v25 = vadd.f32 %v1201_v44, %v327_v48  ;;  %v1341_v7 = vadd.f32 %v1249_v21, %v339_v50  ;;  %v1241_v28 = vadd.f32 %v1240_v24, %v2707_v59  ;;  %v329_v59 = vld [vmem:[#allocation2 + $0x70] sm:$0xff]  ;;  %v348_v24 = vld [vmem:[#allocation2 + $0xa0] sm:$0xff] }
 0x211   : > { %v914_v54 = vpop.f32.mrf.mxu0  ;;  %v1963_v36 = vpop.f32.mrf.mxu1 }
 0x212   : > { %1393 = vst [vmem:[#allocation2 + $0xe8] sm:$0xff] %v1329_v25  ;;  %1405 = vst [vmem:[#allocation2 + $0x68] sm:$0xff] %v1341_v7  ;;  %v1339_v61 = vadd.f32 %v1241_v28, %v337_v10  ;;  %v1204_v37 = vadd.f32 %v2788_v42, %v914_v54  ;;  %v1252_v12 = vadd.f32 %v1963_v36, %v2719_v8 }
 0x213   : > { %v916_v3 = vpop.f32.mrf.mxu0  ;;  %v1243_v40 = vpop.f32.mrf.mxu1 }
 0x214   : > { %1403 = vst [vmem:[#allocation2 + $0x170] sm:$0xff] %v1339_v61  ;;  %v1330_v41 = vadd.f32 %v1204_v37, %v328_v47  ;;  %v1342_v45 = vadd.f32 %v1252_v12, %v340_v22  ;;  %v1244_v2 = vadd.f32 %v1243_v40, %v2711_v63  ;;  %v330_v63 = vld [vmem:[#allocation2 + $0x90] sm:$0xff] }
 0x215   : > { %v919_v34 = vpop.f32.mrf.mxu0  ;;  %v1966_v52 = vpop.f32.mrf.mxu1  ;;  %v346_v47 = vld [vmem:[#allocation2 + $0x10] sm:$0xff] }
 0x216   : > { %1394 = vst [vmem:[#allocation2 + $0x78] sm:$0xff] %v1330_v41  ;;  %1406 = vst [vmem:[#allocation2 + $0x190] sm:$0xff] %v1342_v45  ;;  %v1340_v53 = vadd.f32 %v1244_v2, %v338_v14  ;;  %v1209_v58 = vadd.f32 %v2792_v29, %v919_v34  ;;  %v1265_v42 = vadd.f32 %v1966_v52, %v2731_v19 }
 0x217   : > { %v921_v8 = vpop.f32.mrf.mxu0  ;;  %v1256_v33 = vpop.f32.mrf.mxu1 }
 0x218   : > { %1404 = vst [vmem:[#allocation2 + $0x178] sm:$0xff] %v1340_v53  ;;  %v1331_v56 = vadd.f32 %v1209_v58, %v329_v59  ;;  %v1345_v57 = vadd.f32 %v1265_v42, %v343_v49  ;;  %v1257_v60 = vadd.f32 %v1256_v33, %v2723_v11  ;;  %v331_v11 = vld [vmem:[#allocation2 + $0x1d8] sm:$0xff] }
 0x219   : > { %v922_v0 = vpop.f32.mrf.mxu0  ;;  %v1967_v5 = vpop.f32.mrf.mxu1 }
 0x21a   : > { %1395 = vst [vmem:[#allocation2 + $0x70] sm:$0xff] %v1331_v56  ;;  %1409 = vst [vmem:[#allocation2 + $0xc0] sm:$0xff] %v1345_v57  ;;  %v1343_v1 = vadd.f32 %v1257_v60, %v341_v26  ;;  %v1212_v6 = vadd.f32 %v2796_v20, %v922_v0  ;;  %v1268_v29 = vadd.f32 %v1967_v5, %v2735_v23 }
 0x21b   : > { %v924_v19 = vpop.f32.mrf.mxu0  ;;  %v1259_v30 = vpop.f32.mrf.mxu1 }
 0x21c   : > { %1407 = vst [vmem:[#allocation2 + $0x198] sm:$0xff] %v1343_v1  ;;  %v1332_v62 = vadd.f32 %v1212_v6, %v330_v63  ;;  %v1346_v51 = vadd.f32 %v1268_v29, %v344_v38  ;;  %v1260_v9 = vadd.f32 %v1259_v30, %v2727_v15  ;;  %v332_v15 = vld [vmem:[#allocation2 + $0xd0] sm:$0xff] }
 0x21d   : > { %v927_v13 = vpop.f32.mrf.mxu0  ;;  %v1970_v48 = vpop.f32.mrf.mxu1 }
 0x21e   : > { %1396 = vst [vmem:[#allocation2 + $0x90] sm:$0xff] %v1332_v62  ;;  %1410 = vst [vmem:[#allocation2 + $0x1c0] sm:$0xff] %v1346_v51  ;;  %v1344_v43 = vadd.f32 %v1260_v9, %v342_v4  ;;  %v1217_v50 = vadd.f32 %v2790_v32, %v927_v13  ;;  %v1281_v20 = vadd.f32 %v1970_v48, %v2747_v35 }
 0x21f   : > { %v929_v23 = vpop.f32.mrf.mxu0  ;;  %v1272_v17 = vpop.f32.mrf.mxu1 }
 0x220   : > { %1408 = vst [vmem:[#allocation2 + $0x38] sm:$0xff] %v1344_v43  ;;  %v1333_v44 = vadd.f32 %v1217_v50, %v331_v11  ;;  %v1349_v21 = vadd.f32 %v1281_v20, %v347_v16  ;;  %v1273_v55 = vadd.f32 %v1272_v17, %v2739_v27 }
 0x221   : > { %v930_v10 = vpop.f32.mrf.mxu0  ;;  %v1971_v25 = vpop.f32.mrf.mxu1 }
 0x222   : > { %1397 = vst [vmem:[#allocation2 + $0x1d8] sm:$0xff] %v1333_v44  ;;  %1413 = vst [vmem:[#allocation2 + $0x58] sm:$0xff] %v1349_v21  ;;  %v1347_v7 = vadd.f32 %v1273_v55, %v345_v18  ;;  %v1220_v28 = vadd.f32 %v2794_v46, %v930_v10  ;;  %v1284_v32 = vadd.f32 %v1971_v25, %v2751_v39 }
 0x223   : > { %v932_v35 = vpop.f32.mrf.mxu0  ;;  %v1275_v54 = vpop.f32.mrf.mxu1 }
 0x224   : > { %1411 = vst [vmem:[#allocation2 + $0x158] sm:$0xff] %v1347_v7  ;;  %v1334_v22 = vadd.f32 %v1220_v28, %v332_v15  ;;  %v1350_v36 = vadd.f32 %v1284_v32, %v348_v24  ;;  %v1276_v61 = vadd.f32 %v1275_v54, %v2743_v31  ;;  %1418 = sbr.rel (%p1845_p7) target bundleno = 609 (0x261), region = 44 }
 0x226   : > { %1398 = vst [vmem:[#allocation2 + $0xd0] sm:$0xff] %v1334_v22  ;;  %1414 = vst [vmem:[#allocation2 + $0xa0] sm:$0xff] %v1350_v36  ;;  %v1348_v27 = vadd.f32 %v1276_v61, %v346_v47 }
 0x228   : > { %1412 = vst [vmem:[#allocation2 + $0x10] sm:$0xff] %v1348_v27 }
 0x229   : > { %v1419_v37 = vld [vmem:[#allocation2 + $0xb0] sm:$0xff]  ;;  %v1421_v46 = vld [vmem:[#allocation2 + $0xd8] sm:$0xff]  ;;  %v1424_v45 = vld [vmem:[#allocation2 + $0x168] sm:$0xff] }
 0x22a   : > { %v1420_v12 = vld [vmem:[#allocation2 + $0x1b0] sm:$0xff]  ;;  %vm1483_vm0 = vcmp.gt.f32.partialorder %v1419_v37, 0.0  ;;  %v1547_v39 = vmul.f32 0.2, %v1419_v37  ;;  %vm1485_vm2 = vcmp.gt.f32.partialorder %v1421_v46, 0.0  ;;  %v1422_v40 = vld [vmem:[#allocation2 + $0x18] sm:$0xff] }
 0x22b   : > { %vm1484_vm1 = vcmp.gt.f32.partialorder %v1420_v12, 0.0  ;;  %v1548_v3 = vmul.f32 0.2, %v1420_v12  ;;  %v1549_v14 = vmul.f32 0.2, %v1421_v46  ;;  %v1423_v41 = vld [vmem:[#allocation2 + $0x50] sm:$0xff] }
 0x22c   : > { %v1611_v31 = vsel %vm1483_vm0, %v1419_v37, %v1547_v39  ;;  %vm1486_vm3 = vcmp.gt.f32.partialorder %v1422_v40, 0.0  ;;  %v1550_v59 = vmul.f32 0.2, %v1422_v40  ;;  %v1425_v34 = vld [vmem:[#allocation2 + $0x130] sm:$0xff]  ;;  %v1426_v49 = vld [vmem:[#allocation2 + $0x48] sm:$0xff]  ;;  %v1427_v52 = vld [vmem:[#allocation2 + $0x180] sm:$0xff] }
 0x22d   : > { %v1612_v2 = vsel %vm1484_vm1, %v1420_v12, %v1548_v3  ;;  %1675 = vst [vmem:[#allocation8] sm:$0xff] %v1611_v31  ;;  %v1613_v53 = vsel %vm1485_vm2, %v1421_v46, %v1549_v14  ;;  %vm1487_vm4 = vcmp.gt.f32.partialorder %v1423_v41, 0.0  ;;  %v1551_v58 = vmul.f32 0.2, %v1423_v41  ;;  %v1428_v42 = vld [vmem:[#allocation2 + $0x110] sm:$0xff]  ;;  %v1429_v56 = vld [vmem:[#allocation2 + $0x118] sm:$0xff] }
 0x22e   : > { %1676 = vst [vmem:[#allocation8 + $0x8] sm:$0xff] %v1612_v2  ;;  %vm1488_vm5 = vcmp.gt.f32.partialorder %v1424_v45, 0.0  ;;  %1677 = vst [vmem:[#allocation8 + $0x10] sm:$0xff] %v1613_v53  ;;  %v1614_v8 = vsel %vm1486_vm3, %v1422_v40, %v1550_v59  ;;  %v1552_v26 = vmul.f32 0.2, %v1424_v45  ;;  %vm1489_vm6 = vcmp.gt.f32.partialorder %v1425_v34, 0.0 }
 0x22f   : > { %v1553_v33 = vmul.f32 0.2, %v1425_v34  ;;  %1678 = vst [vmem:[#allocation8 + $0x18] sm:$0xff] %v1614_v8  ;;  %v1615_v57 = vsel %vm1487_vm4, %v1423_v41, %v1551_v58  ;;  %vm1490_vm7 = vcmp.gt.f32.partialorder %v1426_v49, 0.0  ;;  %v1554_v60 = vmul.f32 0.2, %v1426_v49 }
 0x230   : > { %vm1491_vm8 = vcmp.gt.f32.partialorder %v1427_v52, 0.0  ;;  %v1430_v63 = vld [vmem:[#allocation2 + $0x98] sm:$0xff]  ;;  %v1431_v0 = vld [vmem:[#allocation2 + $0x120] sm:$0xff]  ;;  %1679 = vst [vmem:[#allocation8 + $0x20] sm:$0xff] %v1615_v57  ;;  %v1616_v38 = vsel %vm1488_vm5, %v1424_v45, %v1552_v26  ;;  %v1555_v1 = vmul.f32 0.2, %v1427_v52 }
 0x231   : > { %v1617_v5 = vsel %vm1489_vm6, %v1425_v34, %v1553_v33  ;;  %vm1492_vm9 = vcmp.gt.f32.partialorder %v1428_v42, 0.0  ;;  %v1432_v6 = vld [vmem:[#allocation2 + $0x150] sm:$0xff]  ;;  %1680 = vst [vmem:[#allocation8 + $0x28] sm:$0xff] %v1616_v38  ;;  %v1618_v29 = vsel %vm1490_vm7, %v1426_v49, %v1554_v60  ;;  %v1556_v19 = vmul.f32 0.2, %v1428_v42  ;;  %v1433_v30 = vld [vmem:[#allocation2 + $0x108] sm:$0xff] }
 0x232   : > { %1681 = vst [vmem:[#allocation8 + $0x30] sm:$0xff] %v1617_v5  ;;  %vm1493_vm10 = vcmp.gt.f32.partialorder %v1429_v56, 0.0  ;;  %v1557_v4 = vmul.f32 0.2, %v1429_v56  ;;  %1682 = vst [vmem:[#allocation8 + $0x38] sm:$0xff] %v1618_v29  ;;  %v1619_v62 = vsel %vm1491_vm8, %v1427_v52, %v1555_v1  ;;  %vm1494_vm11 = vcmp.gt.f32.partialorder %v1430_v63, 0.0 }
 0x233   : > { %v1558_v51 = vmul.f32 0.2, %v1430_v63  ;;  %vm1495_vm12 = vcmp.gt.f32.partialorder %v1431_v0, 0.0  ;;  %v1434_v9 = vld [vmem:[#allocation2 + $0x60] sm:$0xff]  ;;  %1683 = vst [vmem:[#allocation8 + $0x40] sm:$0xff] %v1619_v62  ;;  %v1620_v13 = vsel %vm1492_vm9, %v1428_v42, %v1556_v19  ;;  %vm1496_vm13 = vcmp.gt.f32.partialorder %v1432_v6, 0.0 }
 0x234   : > { %v1435_v11 = vld [vmem:[#allocation2 + $0xe0] sm:$0xff]  ;;  %v1621_v16 = vsel %vm1493_vm10, %v1429_v56, %v1557_v4  ;;  %v1559_v48 = vmul.f32 0.2, %v1431_v0  ;;  %v1436_v43 = vld [vmem:[#allocation2 + $0x188] sm:$0xff]  ;;  %1684 = vst [vmem:[#allocation8 + $0x48] sm:$0xff] %v1620_v13  ;;  %vm1497_vm14 = vcmp.gt.f32.partialorder %v1433_v30, 0.0 }
 0x235   : > { %1685 = vst [vmem:[#allocation8 + $0x50] sm:$0xff] %v1621_v16  ;;  %v1622_v50 = vsel %vm1494_vm11, %v1430_v63, %v1558_v51  ;;  %v1560_v20 = vmul.f32 0.2, %v1432_v6  ;;  %v1561_v23 = vmul.f32 0.2, %v1433_v30  ;;  %v1437_v18 = vld [vmem:[#allocation2 + $0x138] sm:$0xff] }
 0x236   : > { %1686 = vst [vmem:[#allocation8 + $0x58] sm:$0xff] %v1622_v50  ;;  %v1623_v17 = vsel %vm1495_vm12, %v1431_v0, %v1559_v48  ;;  %vm1498_vm15 = vcmp.gt.f32.partialorder %v1434_v9, 0.0  ;;  %v1562_v44 = vmul.f32 0.2, %v1434_v9  ;;  %vm1499_vm0 = vcmp.gt.f32.partialorder %v1435_v11, 0.0  ;;  %v1438_v21 = vld [vmem:[#allocation2 + $0x140] sm:$0xff] }
 0x237   : > { %v1439_v55 = vld [vmem:[#allocation2 + $0x80] sm:$0xff]  ;;  %1687 = vst [vmem:[#allocation8 + $0x60] sm:$0xff] %v1623_v17  ;;  %v1624_v15 = vsel %vm1496_vm13, %v1432_v6, %v1560_v20  ;;  %v1625_v10 = vsel %vm1497_vm14, %v1433_v30, %v1561_v23  ;;  %v1563_v24 = vmul.f32 0.2, %v1435_v11  ;;  %vm1500_vm1 = vcmp.gt.f32.partialorder %v1436_v43, 0.0  ;;  %v1440_v25 = vld [vmem:[#allocation2 + $0x1a8] sm:$0xff] }
 0x238   : > { %1688 = vst [vmem:[#allocation8 + $0x68] sm:$0xff] %v1624_v15  ;;  %1689 = vst [vmem:[#allocation8 + $0x70] sm:$0xff] %v1625_v10  ;;  %v1626_v7 = vsel %vm1498_vm15, %v1434_v9, %v1562_v44  ;;  %v1564_v28 = vmul.f32 0.2, %v1436_v43  ;;  %vm1501_vm2 = vcmp.gt.f32.partialorder %v1437_v18, 0.0  ;;  %v1441_v35 = vld [vmem:[#allocation2 + $0x1b8] sm:$0xff] }
 0x239   : > { %v1565_v32 = vmul.f32 0.2, %v1437_v18  ;;  %1690 = vst [vmem:[#allocation8 + $0x78] sm:$0xff] %v1626_v7  ;;  %v1627_v47 = vsel %vm1499_vm0, %v1435_v11, %v1563_v24  ;;  %vm1502_vm3 = vcmp.gt.f32.partialorder %v1438_v21, 0.0  ;;  %v1566_v54 = vmul.f32 0.2, %v1438_v21 }
 0x23a   : > { %vm1503_vm4 = vcmp.gt.f32.partialorder %v1439_v55, 0.0  ;;  %v1442_v22 = vld [vmem:[#allocation2 + $0x28] sm:$0xff]  ;;  %1691 = vst [vmem:[#allocation8 + $0x80] sm:$0xff] %v1627_v47  ;;  %v1628_v61 = vsel %vm1500_vm1, %v1436_v43, %v1564_v28  ;;  %v1567_v37 = vmul.f32 0.2, %v1439_v55  ;;  %vm1504_vm5 = vcmp.gt.f32.partialorder %v1440_v25, 0.0 }
 0x23b   : > { %v1443_v36 = vld [vmem:[#allocation2 + $0x1e8] sm:$0xff]  ;;  %v1629_v27 = vsel %vm1501_vm2, %v1437_v18, %v1565_v32  ;;  %v1444_v12 = vld [vmem:[#allocation2 + $0xf8] sm:$0xff]  ;;  %1692 = vst [vmem:[#allocation8 + $0x88] sm:$0xff] %v1628_v61  ;;  %v1630_v46 = vsel %vm1502_vm3, %v1438_v21, %v1566_v54  ;;  %v1568_v39 = vmul.f32 0.2, %v1440_v25  ;;  %vm1505_vm6 = vcmp.gt.f32.partialorder %v1441_v35, 0.0 }
 0x23c   : > { %1693 = vst [vmem:[#allocation8 + $0x90] sm:$0xff] %v1629_v27  ;;  %v1569_v3 = vmul.f32 0.2, %v1441_v35  ;;  %v1445_v14 = vld [vmem:[#allocation2 + $0x160] sm:$0xff]  ;;  %1694 = vst [vmem:[#allocation8 + $0x98] sm:$0xff] %v1630_v46  ;;  %v1631_v40 = vsel %vm1503_vm4, %v1439_v55, %v1567_v37  ;;  %vm1506_vm7 = vcmp.gt.f32.partialorder %v1442_v22, 0.0 }
 0x23d   : > { %v1570_v41 = vmul.f32 0.2, %v1442_v22  ;;  %vm1507_vm8 = vcmp.gt.f32.partialorder %v1443_v36, 0.0  ;;  %v1446_v45 = vld [vmem:[#allocation2 + $0x30] sm:$0xff]  ;;  %v1447_v31 = vld [vmem:[#allocation2 + $0x1e0] sm:$0xff]  ;;  %1695 = vst [vmem:[#allocation8 + $0xa0] sm:$0xff] %v1631_v40  ;;  %v1632_v2 = vsel %vm1504_vm5, %v1440_v25, %v1568_v39 }
 0x23e   : > { %v1633_v59 = vsel %vm1505_vm6, %v1441_v35, %v1569_v3  ;;  %v1571_v34 = vmul.f32 0.2, %v1443_v36  ;;  %vm1508_vm9 = vcmp.gt.f32.partialorder %v1444_v12, 0.0  ;;  %v1448_v49 = vld [vmem:[#allocation2] sm:$0xff]  ;;  %1696 = vst [vmem:[#allocation8 + $0xa8] sm:$0xff] %v1632_v2  ;;  %vm1509_vm10 = vcmp.gt.f32.partialorder %v1445_v14, 0.0 }
 0x23f   : > { %1697 = vst [vmem:[#allocation8 + $0xb0] sm:$0xff] %v1633_v59  ;;  %v1634_v52 = vsel %vm1506_vm7, %v1442_v22, %v1570_v41  ;;  %v1572_v53 = vmul.f32 0.2, %v1444_v12  ;;  %v1573_v58 = vmul.f32 0.2, %v1445_v14  ;;  %v1449_v42 = vld [vmem:[#allocation2 + $0xf0] sm:$0xff] }
 0x240   : > { %1698 = vst [vmem:[#allocation8 + $0xb8] sm:$0xff] %v1634_v52  ;;  %v1635_v8 = vsel %vm1507_vm8, %v1443_v36, %v1571_v34  ;;  %vm1510_vm11 = vcmp.gt.f32.partialorder %v1446_v45, 0.0  ;;  %v1574_v26 = vmul.f32 0.2, %v1446_v45  ;;  %vm1511_vm12 = vcmp.gt.f32.partialorder %v1447_v31, 0.0  ;;  %v1450_v33 = vld [vmem:[#allocation2 + $0x8] sm:$0xff] }
 0x241   : > { %v1451_v56 = vld [vmem:[#allocation2 + $0x148] sm:$0xff]  ;;  %1699 = vst [vmem:[#allocation8 + $0xc0] sm:$0xff] %v1635_v8  ;;  %v1636_v57 = vsel %vm1508_vm9, %v1444_v12, %v1572_v53  ;;  %v1637_v60 = vsel %vm1509_vm10, %v1445_v14, %v1573_v58  ;;  %v1575_v63 = vmul.f32 0.2, %v1447_v31  ;;  %vm1512_vm13 = vcmp.gt.f32.partialorder %v1448_v49, 0.0  ;;  %v1452_v0 = vld [vmem:[#allocation2 + $0x1d0] sm:$0xff] }
 0x242   : > { %1700 = vst [vmem:[#allocation8 + $0xc8] sm:$0xff] %v1636_v57  ;;  %1701 = vst [vmem:[#allocation8 + $0xd0] sm:$0xff] %v1637_v60  ;;  %v1638_v38 = vsel %vm1510_vm11, %v1446_v45, %v1574_v26  ;;  %v1576_v5 = vmul.f32 0.2, %v1448_v49  ;;  %vm1513_vm14 = vcmp.gt.f32.partialorder %v1449_v42, 0.0  ;;  %v1453_v6 = vld [vmem:[#allocation2 + $0x100] sm:$0xff] }
 0x243   : > { %v1577_v1 = vmul.f32 0.2, %v1449_v42  ;;  %1702 = vst [vmem:[#allocation8 + $0xd8] sm:$0xff] %v1638_v38  ;;  %v1639_v29 = vsel %vm1511_vm12, %v1447_v31, %v1575_v63  ;;  %vm1514_vm15 = vcmp.gt.f32.partialorder %v1450_v33, 0.0  ;;  %v1578_v19 = vmul.f32 0.2, %v1450_v33 }
 0x244   : > { %vm1515_vm0 = vcmp.gt.f32.partialorder %v1451_v56, 0.0  ;;  %v1454_v4 = vld [vmem:[#allocation2 + $0xc8] sm:$0xff]  ;;  %v1455_v30 = vld [vmem:[#allocation2 + $0x40] sm:$0xff]  ;;  %1703 = vst [vmem:[#allocation8 + $0xe0] sm:$0xff] %v1639_v29  ;;  %v1640_v62 = vsel %vm1512_vm13, %v1448_v49, %v1576_v5  ;;  %v1579_v9 = vmul.f32 0.2, %v1451_v56 }
 0x245   : > { %v1641_v51 = vsel %vm1513_vm14, %v1449_v42, %v1577_v1  ;;  %vm1516_vm1 = vcmp.gt.f32.partialorder %v1452_v0, 0.0  ;;  %v1456_v11 = vld [vmem:[#allocation2 + $0x1f8] sm:$0xff]  ;;  %1704 = vst [vmem:[#allocation8 + $0xe8] sm:$0xff] %v1640_v62  ;;  %v1642_v13 = vsel %vm1514_vm15, %v1450_v33, %v1578_v19  ;;  %v1580_v16 = vmul.f32 0.2, %v1452_v0  ;;  %v1457_v43 = vld [vmem:[#allocation2 + $0x20] sm:$0xff] }
 0x246   : > { %1705 = vst [vmem:[#allocation8 + $0xf0] sm:$0xff] %v1641_v51  ;;  %vm1517_vm2 = vcmp.gt.f32.partialorder %v1453_v6, 0.0  ;;  %v1581_v48 = vmul.f32 0.2, %v1453_v6  ;;  %1706 = vst [vmem:[#allocation8 + $0xf8] sm:$0xff] %v1642_v13  ;;  %v1643_v50 = vsel %vm1515_vm0, %v1451_v56, %v1579_v9  ;;  %vm1518_vm3 = vcmp.gt.f32.partialorder %v1454_v4, 0.0 }
 0x247   : > { %v1582_v20 = vmul.f32 0.2, %v1454_v4  ;;  %vm1519_vm4 = vcmp.gt.f32.partialorder %v1455_v30, 0.0  ;;  %v1458_v23 = vld [vmem:[#allocation2 + $0x128] sm:$0xff]  ;;  %v1459_v18 = vld [vmem:[#allocation2 + $0x1a0] sm:$0xff]  ;;  %1707 = vst [vmem:[#allocation8 + $0x100] sm:$0xff] %v1643_v50  ;;  %v1644_v17 = vsel %vm1516_vm1, %v1452_v0, %v1580_v16 }
 0x248   : > { %v1645_v44 = vsel %vm1517_vm2, %v1453_v6, %v1581_v48  ;;  %v1583_v21 = vmul.f32 0.2, %v1455_v30  ;;  %vm1520_vm5 = vcmp.gt.f32.partialorder %v1456_v11, 0.0  ;;  %v1460_v55 = vld [vmem:[#allocation2 + $0x1f0] sm:$0xff]  ;;  %1708 = vst [vmem:[#allocation8 + $0x108] sm:$0xff] %v1644_v17  ;;  %vm1521_vm6 = vcmp.gt.f32.partialorder %v1457_v43, 0.0 }
 0x249   : > { %1709 = vst [vmem:[#allocation8 + $0x110] sm:$0xff] %v1645_v44  ;;  %v1646_v15 = vsel %vm1518_vm3, %v1454_v4, %v1582_v20  ;;  %v1584_v10 = vmul.f32 0.2, %v1456_v11  ;;  %v1585_v24 = vmul.f32 0.2, %v1457_v43  ;;  %v1461_v25 = vld [vmem:[#allocation2 + $0xe8] sm:$0xff] }
 0x24a   : > { %1710 = vst [vmem:[#allocation8 + $0x118] sm:$0xff] %v1646_v15  ;;  %v1647_v7 = vsel %vm1519_vm4, %v1455_v30, %v1583_v21  ;;  %vm1522_vm7 = vcmp.gt.f32.partialorder %v1458_v23, 0.0  ;;  %v1586_v28 = vmul.f32 0.2, %v1458_v23  ;;  %vm1523_vm8 = vcmp.gt.f32.partialorder %v1459_v18, 0.0  ;;  %v1462_v32 = vld [vmem:[#allocation2 + $0x78] sm:$0xff] }
 0x24b   : > { %v1463_v35 = vld [vmem:[#allocation2 + $0x70] sm:$0xff]  ;;  %1711 = vst [vmem:[#allocation8 + $0x120] sm:$0xff] %v1647_v7  ;;  %v1648_v47 = vsel %vm1520_vm5, %v1456_v11, %v1584_v10  ;;  %v1649_v54 = vsel %vm1521_vm6, %v1457_v43, %v1585_v24  ;;  %v1587_v22 = vmul.f32 0.2, %v1459_v18  ;;  %vm1524_vm9 = vcmp.gt.f32.partialorder %v1460_v55, 0.0  ;;  %v1465_v12 = vld [vmem:[#allocation2 + $0x1d8] sm:$0xff] }
 0x24c   : > { %v1464_v36 = vld [vmem:[#allocation2 + $0x90] sm:$0xff]  ;;  %1712 = vst [vmem:[#allocation8 + $0x128] sm:$0xff] %v1648_v47  ;;  %1713 = vst [vmem:[#allocation8 + $0x130] sm:$0xff] %v1649_v54  ;;  %v1650_v61 = vsel %vm1522_vm7, %v1458_v23, %v1586_v28  ;;  %v1588_v27 = vmul.f32 0.2, %v1460_v55  ;;  %vm1525_vm10 = vcmp.gt.f32.partialorder %v1461_v25, 0.0 }
 0x24d   : > { %v1589_v37 = vmul.f32 0.2, %v1461_v25  ;;  %1714 = vst [vmem:[#allocation8 + $0x138] sm:$0xff] %v1650_v61  ;;  %v1651_v46 = vsel %vm1523_vm8, %v1459_v18, %v1587_v22  ;;  %vm1526_vm11 = vcmp.gt.f32.partialorder %v1462_v32, 0.0  ;;  %v1590_v39 = vmul.f32 0.2, %v1462_v32 }
 0x24e   : > { %vm1527_vm12 = vcmp.gt.f32.partialorder %v1463_v35, 0.0  ;;  %v1466_v3 = vld [vmem:[#allocation2 + $0xd0] sm:$0xff]  ;;  %v1467_v14 = vld [vmem:[#allocation2 + $0xb8] sm:$0xff]  ;;  %1715 = vst [vmem:[#allocation8 + $0x140] sm:$0xff] %v1651_v46  ;;  %v1652_v40 = vsel %vm1524_vm9, %v1460_v55, %v1588_v27  ;;  %v1591_v45 = vmul.f32 0.2, %v1463_v35 }
 0x24f   : > { %v1653_v41 = vsel %vm1525_vm10, %v1461_v25, %v1589_v37  ;;  %vm1528_vm13 = vcmp.gt.f32.partialorder %v1464_v36, 0.0  ;;  %v1468_v31 = vld [vmem:[#allocation2 + $0x88] sm:$0xff]  ;;  %1716 = vst [vmem:[#allocation8 + $0x148] sm:$0xff] %v1652_v40  ;;  %v1654_v2 = vsel %vm1526_vm11, %v1462_v32, %v1590_v39  ;;  %v1592_v59 = vmul.f32 0.2, %v1464_v36  ;;  %v1471_v42 = vld [vmem:[#allocation2 + $0x170] sm:$0xff] }
 0x250   : > { %1717 = vst [vmem:[#allocation8 + $0x150] sm:$0xff] %v1653_v41  ;;  %vm1529_vm14 = vcmp.gt.f32.partialorder %v1465_v12, 0.0  ;;  %v1593_v34 = vmul.f32 0.2, %v1465_v12  ;;  %v1469_v49 = vld [vmem:[#allocation2 + $0xa8] sm:$0xff]  ;;  %1718 = vst [vmem:[#allocation8 + $0x158] sm:$0xff] %v1654_v2  ;;  %v1655_v52 = vsel %vm1527_vm12, %v1463_v35, %v1591_v45 }
 0x251   : > { %vm1530_vm15 = vcmp.gt.f32.partialorder %v1466_v3, 0.0  ;;  %v1594_v53 = vmul.f32 0.2, %v1466_v3  ;;  %vm1531_vm0 = vcmp.gt.f32.partialorder %v1467_v14, 0.0  ;;  %v1470_v58 = vld [vmem:[#allocation2 + $0x1c8] sm:$0xff]  ;;  %1719 = vst [vmem:[#allocation8 + $0x160] sm:$0xff] %v1655_v52  ;;  %v1656_v8 = vsel %vm1528_vm13, %v1464_v36, %v1592_v59 }
 0x252   : > { %v1657_v26 = vsel %vm1529_vm14, %v1465_v12, %v1593_v34  ;;  %v1595_v33 = vmul.f32 0.2, %v1467_v14  ;;  %vm1532_vm1 = vcmp.gt.f32.partialorder %v1468_v31, 0.0  ;;  %v1472_v56 = vld [vmem:[#allocation2 + $0x178] sm:$0xff]  ;;  %1720 = vst [vmem:[#allocation8 + $0x168] sm:$0xff] %v1656_v8  ;;  %vm1533_vm2 = vcmp.gt.f32.partialorder %v1469_v49, 0.0 }
 0x253   : > { %1721 = vst [vmem:[#allocation8 + $0x170] sm:$0xff] %v1657_v26  ;;  %v1658_v57 = vsel %vm1530_vm15, %v1466_v3, %v1594_v53  ;;  %v1596_v60 = vmul.f32 0.2, %v1468_v31  ;;  %v1597_v63 = vmul.f32 0.2, %v1469_v49  ;;  %v1473_v0 = vld [vmem:[#allocation2 + $0x68] sm:$0xff] }
 0x254   : > { %1722 = vst [vmem:[#allocation8 + $0x178] sm:$0xff] %v1658_v57  ;;  %v1659_v38 = vsel %vm1531_vm0, %v1467_v14, %v1595_v33  ;;  %vm1534_vm3 = vcmp.gt.f32.partialorder %v1470_v58, 0.0  ;;  %v1598_v5 = vmul.f32 0.2, %v1470_v58  ;;  %vm1535_vm4 = vcmp.gt.f32.partialorder %v1471_v42, 0.0  ;;  %v1474_v1 = vld [vmem:[#allocation2 + $0x190] sm:$0xff] }
 0x255   : > { %v1475_v6 = vld [vmem:[#allocation2 + $0x198] sm:$0xff]  ;;  %1723 = vst [vmem:[#allocation8 + $0x180] sm:$0xff] %v1659_v38  ;;  %v1660_v29 = vsel %vm1532_vm1, %v1468_v31, %v1596_v60  ;;  %v1661_v19 = vsel %vm1533_vm2, %v1469_v49, %v1597_v63  ;;  %v1599_v4 = vmul.f32 0.2, %v1471_v42  ;;  %vm1536_vm5 = vcmp.gt.f32.partialorder %v1472_v56, 0.0  ;;  %v1477_v11 = vld [vmem:[#allocation2 + $0xc0] sm:$0xff] }
 0x256   : > { %v1476_v30 = vld [vmem:[#allocation2 + $0x38] sm:$0xff]  ;;  %1724 = vst [vmem:[#allocation8 + $0x188] sm:$0xff] %v1660_v29  ;;  %1725 = vst [vmem:[#allocation8 + $0x190] sm:$0xff] %v1661_v19  ;;  %v1662_v62 = vsel %vm1534_vm3, %v1470_v58, %v1598_v5  ;;  %v1600_v51 = vmul.f32 0.2, %v1472_v56  ;;  %vm1537_vm6 = vcmp.gt.f32.partialorder %v1473_v0, 0.0 }
 0x257   : > { %v1601_v9 = vmul.f32 0.2, %v1473_v0  ;;  %1726 = vst [vmem:[#allocation8 + $0x198] sm:$0xff] %v1662_v62  ;;  %v1663_v13 = vsel %vm1535_vm4, %v1471_v42, %v1599_v4  ;;  %vm1538_vm7 = vcmp.gt.f32.partialorder %v1474_v1, 0.0  ;;  %v1602_v16 = vmul.f32 0.2, %v1474_v1 }
 0x258   : > { %vm1539_vm8 = vcmp.gt.f32.partialorder %v1475_v6, 0.0  ;;  %v1478_v48 = vld [vmem:[#allocation2 + $0x1c0] sm:$0xff]  ;;  %v1479_v43 = vld [vmem:[#allocation2 + $0x158] sm:$0xff]  ;;  %1727 = vst [vmem:[#allocation8 + $0x1a0] sm:$0xff] %v1663_v13  ;;  %v1664_v50 = vsel %vm1536_vm5, %v1472_v56, %v1600_v51  ;;  %v1603_v23 = vmul.f32 0.2, %v1475_v6 }
 0x259   : > { %v1665_v20 = vsel %vm1537_vm6, %v1473_v0, %v1601_v9  ;;  %vm1540_vm9 = vcmp.gt.f32.partialorder %v1476_v30, 0.0  ;;  %v1480_v18 = vld [vmem:[#allocation2 + $0x10] sm:$0xff]  ;;  %1728 = vst [vmem:[#allocation8 + $0x1a8] sm:$0xff] %v1664_v50  ;;  %v1666_v17 = vsel %vm1538_vm7, %v1474_v1, %v1602_v16  ;;  %v1604_v44 = vmul.f32 0.2, %v1476_v30  ;;  %v1481_v55 = vld [vmem:[#allocation2 + $0x58] sm:$0xff] }
 0x25a   : > { %1729 = vst [vmem:[#allocation8 + $0x1b0] sm:$0xff] %v1665_v20  ;;  %vm1541_vm10 = vcmp.gt.f32.partialorder %v1477_v11, 0.0  ;;  %v1605_v21 = vmul.f32 0.2, %v1477_v11  ;;  %1730 = vst [vmem:[#allocation8 + $0x1b8] sm:$0xff] %v1666_v17  ;;  %v1667_v15 = vsel %vm1539_vm8, %v1475_v6, %v1603_v23  ;;  %vm1542_vm11 = vcmp.gt.f32.partialorder %v1478_v48, 0.0 }
 0x25b   : > { %v1606_v10 = vmul.f32 0.2, %v1478_v48  ;;  %vm1543_vm12 = vcmp.gt.f32.partialorder %v1479_v43, 0.0  ;;  %v1482_v24 = vld [vmem:[#allocation2 + $0xa0] sm:$0xff]  ;;  %1731 = vst [vmem:[#allocation8 + $0x1c0] sm:$0xff] %v1667_v15  ;;  %v1668_v25 = vsel %vm1540_vm9, %v1476_v30, %v1604_v44  ;;  %vm1544_vm13 = vcmp.gt.f32.partialorder %v1480_v18, 0.0 }
 0x25c   : > { %v1669_v7 = vsel %vm1541_vm10, %v1477_v11, %v1605_v21  ;;  %v1607_v28 = vmul.f32 0.2, %v1479_v43  ;;  %1732 = vst [vmem:[#allocation8 + $0x1c8] sm:$0xff] %v1668_v25  ;;  %v1608_v35 = vmul.f32 0.2, %v1480_v18  ;;  %vm1545_vm14 = vcmp.gt.f32.partialorder %v1481_v55, 0.0 }
 0x25d   : > { %1733 = vst [vmem:[#allocation8 + $0x1d0] sm:$0xff] %v1669_v7  ;;  %v1670_v32 = vsel %vm1542_vm11, %v1478_v48, %v1606_v10  ;;  %v1609_v47 = vmul.f32 0.2, %v1481_v55  ;;  %vm1546_vm15 = vcmp.gt.f32.partialorder %v1482_v24, 0.0  ;;  %v1610_v22 = vmul.f32 0.2, %v1482_v24 }
 0x25e   : > { %1734 = vst [vmem:[#allocation8 + $0x1d8] sm:$0xff] %v1670_v32  ;;  %v1671_v54 = vsel %vm1543_vm12, %v1479_v43, %v1607_v28  ;;  %v1672_v36 = vsel %vm1544_vm13, %v1480_v18, %v1608_v35 }
 0x25f   : > { %1735 = vst [vmem:[#allocation8 + $0x1e0] sm:$0xff] %v1671_v54  ;;  %v1673_v61 = vsel %vm1545_vm14, %v1481_v55, %v1609_v47  ;;  %1736 = vst [vmem:[#allocation8 + $0x1e8] sm:$0xff] %v1672_v36  ;;  %v1674_v27 = vsel %vm1546_vm15, %v1482_v24, %v1610_v22 }
 0x260   : > { %1737 = vst [vmem:[#allocation8 + $0x1f0] sm:$0xff] %v1673_v61  ;;  %1738 = vst [vmem:[#allocation8 + $0x1f8] sm:$0xff] %v1674_v27 }
 0x261 PF: > { %p2850_p11 = scmp.eq.s32.totalorder %s1838_s15, 1  ;;  %s2233_s19 = smov [#allocation8]  }
 0x262   : > { %s1748_s18 = sshll.u32 %s2233_s19, 4  ;;  %s1749_s18 = int_to_ptr.vmem [resolvable:$true] %s1748_s18 }
 0x263   : > { %s2140_s24 = scalar_lea.vmem %s1749_s18, 8192  ;;  %p2147_p6 = scmp.lt.s32.totalorder %s1749_s18, %s1749_s18 }
 0x264   : > { %p2141_p3 = scmp.ne.s32.totalorder %s1749_s18, %s2140_s24  ;;  %p2148_p8 = scmp.lt.s32.totalorder %s2140_s24, %s2140_s24 }
 0x266   : > { %p2142_p4 = pnand %p2141_p3, %p2850_p11  ;;  %p2149_p12 = por %p2148_p8, %p2147_p6 }
 0x268   : > { %p2143_p5 = pneg %p2142_p4 }
 0x26a   : > { %p2150_p13 = pnand %p2149_p12, %p2143_p5 }
 0x26c   : > { %2153 = shalt.err (!%p2150_p13)
}
 0x26d   : > { %s2234_s25 = smov 128   ;;  %s2235_s15 = smov 8  }
 0x26e   : > { %2013 = dma.vmem_to_hbm [thread:$0]  (%p2850_p11), %s1749_s18, 8192, %s2885_s2, [#allocation5], %s2234_s25, %s2234_s25, %s2235_s15  }
 0x26f   : > { %2197 = dma.done.wait (%p2850_p11), [#allocation5], 8192  }
 0x270   : > { %2199 = vsyncadd (%p2850_p11), [#allocation5], 4294959104 }
 0x271 PF: > { %s19_s14 = sadd.s32 1, %s2222_s14   ;;  %s2890_s9 = smov %s2206_s10 }
 0x272   : > { %p16_p10 = scmp.ge.s32.totalorder %s19_s14, 4   ;;  %s2891_s10 = smov %s2210_s11 }
 0x273   : > { %s2892_s11 = smov %s2298_s20  ;;  %s2893_s12 = smov %s2218_s13 }
 0x274   : > { %s2894_s13 = smov %s2896_s16  ;;  %18 = sbr.rel (!%p16_p10) target bundleno = 7 (0x7), region = 87 }
 0x279   :  { %1764 = vsyncpa [#allocation4], 1 }
 0x27a   :  { %1766 = vsyncpa [#allocation4 + $0x1], 1 }
 0x27b   :  { %1767 = vsyncpa [#allocation7], 1 }
 0x27c   :  { %1769 = vsyncpa [#allocation7 + $0x1], 1 }
 0x27d   :  { %1770 = vsyncpa [#allocation5], 1 }
 0x27e   :  { %1772 = vsyncpa [#allocation5 + $0x1], 1 }

</bundles_post_ra>
